<compile_context>
chip_gen: v7x
topology: tpu7x:2x2x1
jax: 0.10.0
libtpu: 0.0.40
codegen_flags: <defaults>
</compile_context>

<pallas_src>
import functools

import jax
import jax.numpy as jnp
import numpy as np
from jax.experimental import pallas as pl
from jax.experimental.pallas import tpu as pltpu

EPS = 1e-5
LANE = 128


def _round_up(x, m):
    return ((x + m - 1) // m) * m


def _vmem_limit_bytes():
    # Per-generation scoped-VMEM budget (v5e/v6e: 128 MiB physical, v7x: 64 MiB).
    try:
        cap = int(pltpu.get_tpu_info().vmem_capacity_bytes)
    except Exception:
        cap = 64 * 1024 * 1024
    return min(int(cap * 3 // 4), 100 * 1024 * 1024)


# ---------------------------------------------------------------------------
# Shared in-kernel helpers.
# ---------------------------------------------------------------------------
def _im2col_matmul(load_tap, col_ref, w_ref, b_ref, Wp, L):
    """3x3 conv as a single im2col MXU matmul in the transposed (C, spatial)
    layout.  `load_tap(off, n)` returns the (C, n) flat-grid slice at `off`."""
    C = col_ref.shape[0] // 9
    for t in range(9):
        dy, dx = divmod(t, 3)
        off = dy * Wp + dx
        # Each tap writes C full L-lane rows of the col matrix (lane-dense).
        col_ref[t * C:(t + 1) * C, :] = load_tap(off, L)
    acc = jnp.dot(w_ref[...], col_ref[...],
                  preferred_element_type=jnp.float32)          # (Cout, L) f32
    return acc + b_ref[...]


def _emit_conv_outputs(acc, mask_ref, y_ref, stats_ref, win0, L):
    """Store pre-BN conv output (padded-grid layout, bf16) + f32 BN partials."""
    mw = mask_ref[:, win0:win0 + L]                   # (1, L) valid-output mask
    stats_ref[0, :, 0:1] = jnp.sum(acc * mw, axis=1, keepdims=True)
    stats_ref[0, :, 1:2] = jnp.sum(acc * acc * mw, axis=1, keepdims=True)
    y_ref[...] = jnp.zeros(y_ref.shape, y_ref.dtype)  # deterministic halo/tail
    y_ref[0, :, win0:win0 + L] = acc.astype(y_ref.dtype)


# ---------------------------------------------------------------------------
# Kernel 1: conv1 (+bias) on the padded flat grid + per-image BN1 partials.
# ---------------------------------------------------------------------------
def _conv_stats_kernel(x_ref, w_ref, b_ref, mask_ref, y_ref, stats_ref,
                       col_ref, *, Wp, L, win0):
    # x_ref   : (1, Cin, Pin)  bf16   zero-padded flat input image
    # w_ref   : (Cmid, 9*Cin)  bf16   im2col weights
    # b_ref   : (Cmid, 1)      f32
    # mask_ref: (1, Pin)       f32    1.0 at valid interior positions
    # y_ref   : (1, Cmid, Pin) bf16   pre-BN conv output (padded-grid layout)
    # stats   : (1, Cmid, 2)   f32    [sum, sum_sq] over valid positions
    # col_ref : (9*Cin, L)     bf16   VMEM im2col scratch
    acc = _im2col_matmul(lambda off, n: x_ref[0, :, off:off + n],
                         col_ref, w_ref, b_ref, Wp, L)
    _emit_conv_outputs(acc, mask_ref, y_ref, stats_ref, win0, L)


# ---------------------------------------------------------------------------
# Kernel 2: fused BN1-apply + ReLU + conv2 (+bias) + per-image BN2 partials.
# ---------------------------------------------------------------------------
def _bn_relu_conv_stats_kernel(y1_ref, scale_ref, shift_ref, w_ref, b_ref,
                               mask_ref, y2_ref, stats_ref, h_ref, col_ref,
                               *, Wp, L, win0):
    # BN-apply + ReLU in f32, re-zero the padded halo (mask), store bf16.
    h = jnp.maximum(y1_ref[0] * scale_ref[...] + shift_ref[...], 0.0)
    h_ref[...] = (h * mask_ref[...]).astype(h_ref.dtype)
    acc = _im2col_matmul(lambda off, n: h_ref[:, off:off + n],
                         col_ref, w_ref, b_ref, Wp, L)
    _emit_conv_outputs(acc, mask_ref, y2_ref, stats_ref, win0, L)


# ---------------------------------------------------------------------------
# Kernel 3: BN2-apply + ReLU + compaction from padded-grid to dense NCHW.
# ---------------------------------------------------------------------------
def _bn_relu_store_kernel(y2_ref, scale_ref, shift_ref, o_ref, *, Wp, W):
    z = jnp.maximum(y2_ref[0] * scale_ref[...] + shift_ref[...], 0.0)
    H = o_ref.shape[2] // W
    for h in range(H):
        src = (h + 1) * Wp + 1
        o_ref[0, :, h * W:(h + 1) * W] = z[:, src:src + W].astype(o_ref.dtype)


# ---------------------------------------------------------------------------
# Wrapper.
# ---------------------------------------------------------------------------
def _prep_w(w_oihw):
    # col row order is (dy, dx, cin) -> weight layout (Cout, dy, dx, cin).
    cout, cin = w_oihw.shape[0], w_oihw.shape[1]
    return (jnp.transpose(w_oihw, (0, 2, 3, 1))
            .reshape(cout, 9 * cin).astype(jnp.bfloat16))


def _prep_b(b):
    return b.astype(jnp.float32).reshape(-1, 1)


def _bn_affine(stats, gamma, beta, cnt):
    """PyTorch training-mode BN: batch mean, biased variance -> scale/shift."""
    s = jnp.sum(stats, axis=0)                                  # (C, 2)
    mean = s[:, 0] / cnt
    var = jnp.maximum(s[:, 1] / cnt - mean * mean, 0.0)
    scale = gamma.astype(jnp.float32) * jax.lax.rsqrt(var + EPS)
    shift = beta.astype(jnp.float32) - mean * scale
    return scale.reshape(-1, 1), shift.reshape(-1, 1)


def _double_conv_impl(x_nchw, p):
    N, Cin, H, W = x_nchw.shape
    Cmid = p["w1"].shape[0]
    Cout = p["w2"].shape[0]
    Hp, Wp = H + 2, W + 2
    P = Hp * Wp                      # flattened padded-image length
    L = H * Wp                       # conv-output window length (incl. garbage cols)
    win0 = Wp + 1                    # window start on the padded flat grid
    Pin = _round_up(P + 2, LANE)     # lane-padded buffer length (>= max tap read)
    cnt = jnp.float32(N * H * W)

    # Static valid-interior mask on the padded flat grid (compile-time const).
    pos = np.arange(Pin)
    row, col = pos // Wp, pos % Wp
    valid = (pos < P) & (row >= 1) & (row <= H) & (col >= 1) & (col <= W)
    mask = jnp.asarray(valid.astype(np.float32)[None, :])       # (1, Pin)

    # Stage-1 input: zero halo + flatten + lane pad + bf16 (one small XLA pass
    # over the network input; intermediates never touch jnp.pad again).
    # TODO(synk): build this first-stage halo in-kernel for large inputs.
    xpad = jnp.pad(x_nchw.astype(jnp.bfloat16),
                   ((0, 0), (0, 0), (1, 1), (1, 1)))
    xflat = jnp.pad(xpad.reshape(N, Cin, P), ((0, 0), (0, 0), (0, Pin - P)))

    w1, b1 = _prep_w(p["w1"]), _prep_b(p["b1"])
    w2, b2 = _prep_w(p["w2"]), _prep_b(p["b2"])

    cparams = pltpu.CompilerParams(dimension_semantics=("parallel",),
                                   vmem_limit_bytes=_vmem_limit_bytes())
    per_img = lambda n: (n, 0, 0)
    bcast = lambda n: (0, 0)

    # --- Kernel 1: conv1 + BN1 partial sums ---------------------------------
    y1, s1 = pl.pallas_call(
        functools.partial(_conv_stats_kernel, Wp=Wp, L=L, win0=win0),
        grid=(N,),
        in_specs=[
            pl.BlockSpec((1, Cin, Pin), per_img),
            pl.BlockSpec((Cmid, 9 * Cin), bcast),
            pl.BlockSpec((Cmid, 1), bcast),
            pl.BlockSpec((1, Pin), bcast),
        ],
        out_specs=(
            pl.BlockSpec((1, Cmid, Pin), per_img),
            pl.BlockSpec((1, Cmid, 2), per_img),
        ),
        out_shape=(
            jax.ShapeDtypeStruct((N, Cmid, Pin), jnp.bfloat16),
            jax.ShapeDtypeStruct((N, Cmid, 2), jnp.float32),
        ),
        scratch_shapes=[pltpu.VMEM((9 * Cin, L), jnp.bfloat16)],
        compiler_params=cparams,
    )(xflat, w1, b1, mask)

    scale1, shift1 = _bn_affine(s1, p["g1"], p["be1"], cnt)

    # --- Kernel 2: BN1-apply + ReLU + conv2 + BN2 partial sums (fused) ------
    y2, s2 = pl.pallas_call(
        functools.partial(_bn_relu_conv_stats_kernel, Wp=Wp, L=L, win0=win0),
        grid=(N,),
        in_specs=[
            pl.BlockSpec((1, Cmid, Pin), per_img),
            pl.BlockSpec((Cmid, 1), bcast),
            pl.BlockSpec((Cmid, 1), bcast),
            pl.BlockSpec((Cout, 9 * Cmid), bcast),
            pl.BlockSpec((Cout, 1), bcast),
            pl.BlockSpec((1, Pin), bcast),
        ],
        out_specs=(
            pl.BlockSpec((1, Cout, Pin), per_img),
            pl.BlockSpec((1, Cout, 2), per_img),
        ),
        out_shape=(
            jax.ShapeDtypeStruct((N, Cout, Pin), jnp.bfloat16),
            jax.ShapeDtypeStruct((N, Cout, 2), jnp.float32),
        ),
        scratch_shapes=[pltpu.VMEM((Cmid, Pin), jnp.bfloat16),
                        pltpu.VMEM((9 * Cmid, L), jnp.bfloat16)],
        compiler_params=cparams,
    )(y1, scale1, shift1, w2, b2, mask)

    scale2, shift2 = _bn_affine(s2, p["g2"], p["be2"], cnt)

    # --- Kernel 3: BN2-apply + ReLU + compact to dense NCHW -----------------
    out = pl.pallas_call(
        functools.partial(_bn_relu_store_kernel, Wp=Wp, W=W),
        grid=(N,),
        in_specs=[
            pl.BlockSpec((1, Cout, Pin), per_img),
            pl.BlockSpec((Cout, 1), bcast),
            pl.BlockSpec((Cout, 1), bcast),
        ],
        out_specs=pl.BlockSpec((1, Cout, H * W), per_img),
        out_shape=jax.ShapeDtypeStruct((N, Cout, H * W), jnp.float32),
        compiler_params=cparams,
    )(y2, scale2, shift2)

    # Free (metadata-only) reshape of a contiguous trailing dim.
    return out.reshape(N, Cout, H, W)


double_conv = jax.jit(_double_conv_impl)


def double_conv_ref(x, p, matmul_dtype=jnp.float32):
    """Pure-JAX reference mirroring the PyTorch forward (NCHW).

    matmul_dtype=jnp.bfloat16 mirrors the kernel's bf16 MXU inputs (with f32
    accumulation); jnp.float32 is the exact fp32 PyTorch forward.
    """
    def conv(x, w, b):
        y = jax.lax.conv_general_dilated(
            x.astype(matmul_dtype), w.astype(matmul_dtype),
            window_strides=(1, 1), padding=((1, 1), (1, 1)),
            dimension_numbers=("NCHW", "OIHW", "NCHW"),
            preferred_element_type=jnp.float32)
        return y + b[None, :, None, None]

    def bn_relu(h, g, be):
        m = jnp.mean(h, axis=(0, 2, 3), keepdims=True)
        v = jnp.mean((h - m) ** 2, axis=(0, 2, 3), keepdims=True)
        y = (h - m) * jax.lax.rsqrt(v + EPS) * g[None, :, None, None] \
            + be[None, :, None, None]
        return jnp.maximum(y, 0.0)

    h = bn_relu(conv(x, p["w1"], p["b1"]), p["g1"], p["be1"])
    return bn_relu(conv(h, p["w2"], p["b2"]), p["g2"], p["be2"])


if __name__ == "__main__":
    N, Cin, Cout, H, W = 2, 4, 8, 16, 16
    key = jax.random.PRNGKey(0)
    ks = jax.random.split(key, 9)

    x = jax.random.normal(ks[0], (N, Cin, H, W), jnp.float32)
    params = dict(
        w1=0.1 * jax.random.normal(ks[1], (Cout, Cin, 3, 3), jnp.float32),
        b1=0.1 * jax.random.normal(ks[2], (Cout,), jnp.float32),
        g1=1.0 + 0.1 * jax.random.normal(ks[3], (Cout,), jnp.float32),
        be1=0.1 * jax.random.normal(ks[4], (Cout,), jnp.float32),
        w2=0.1 * jax.random.normal(ks[5], (Cout, Cout, 3, 3), jnp.float32),
        b2=0.1 * jax.random.normal(ks[6], (Cout,), jnp.float32),
        g2=1.0 + 0.1 * jax.random.normal(ks[7], (Cout,), jnp.float32),
        be2=0.1 * jax.random.normal(ks[8], (Cout,), jnp.float32),
    )

    out = jax.block_until_ready(double_conv(x, params))
    assert out.shape == (N, Cout, H, W), out.shape

    # Check against a reference that mirrors the kernel's bf16 MXU inputs
    # (proves the im2col / flat-padded-grid / fused-BN math is right).
    ref_bf16 = jax.block_until_ready(double_conv_ref(x, params, jnp.bfloat16))
    np.testing.assert_allclose(np.asarray(out), np.asarray(ref_bf16),
                               rtol=2e-2, atol=2e-2)

    # Parity against the pure-f32 PyTorch-equivalent forward; looser tolerance
    # only reflects bf16 rounding of MXU inputs / intermediates.
    ref_f32 = jax.block_until_ready(double_conv_ref(x, params, jnp.float32))
    np.testing.assert_allclose(np.asarray(out), np.asarray(ref_f32),
                               rtol=1e-1, atol=1e-1)

    print("KERNEL_OK")
</pallas_src>

<mosaic_0001>
module attributes {stable_mosaic.version = 11 : i64} {
  func.func @_conv_stats_kernel(%arg0: i32, %arg1: memref<1x4x384xbf16, #tpu.memory_space<vmem>>, %arg2: memref<8x36xbf16, #tpu.memory_space<vmem>>, %arg3: memref<8x1xf32, #tpu.memory_space<vmem>>, %arg4: memref<1x384xf32, #tpu.memory_space<vmem>>, %arg5: memref<1x8x384xbf16, #tpu.memory_space<vmem>>, %arg6: memref<1x8x2xf32, #tpu.memory_space<vmem>>, %arg7: memref<36x288xbf16, #tpu.memory_space<vmem>>) attributes {dimension_semantics = [#tpu.dimension_semantics<parallel>], iteration_bounds = array<i64: 2>, scalar_prefetch = 0 : i64, scratch_operands = 1 : i64, tpu.core_type = #tpu.core_type<tc>, window_params = [{transform_indices = @transform_0, window_bounds = array<i64: 1, 4, 384>}, {pipeline_mode = #tpu.pipeline_mode<synchronous>, transform_indices = @transform_1, window_bounds = array<i64: 8, 36>}, {pipeline_mode = #tpu.pipeline_mode<synchronous>, transform_indices = @transform_2, window_bounds = array<i64: 8, 1>}, {pipeline_mode = #tpu.pipeline_mode<synchronous>, transform_indices = @transform_3, window_bounds = array<i64: 1, 384>}, {transform_indices = @transform_4, window_bounds = array<i64: 1, 8, 384>}, {transform_indices = @transform_5, window_bounds = array<i64: 1, 8, 2>}]} {
    %c0 = arith.constant 0 : index
    %c0_0 = arith.constant 0 : index
    %c0_1 = arith.constant 0 : index
    %0 = vector.load %arg1[%c0, %c0_0, %c0_1] : memref<1x4x384xbf16, #tpu.memory_space<vmem>>, vector<1x4x288xbf16>
    %1 = vector.shape_cast %0 : vector<1x4x288xbf16> to vector<4x288xbf16>
    %c0_2 = arith.constant 0 : index
    %c0_3 = arith.constant 0 : index
    %2 = vector.load %arg7[%c0_2, %c0_3] : memref<36x288xbf16, #tpu.memory_space<vmem>>, vector<4x288xbf16>
    tpu.vector_store %arg7[%c0_2, %c0_3], %1 {strides = array<i32>} : memref<36x288xbf16, #tpu.memory_space<vmem>>, vector<4x288xbf16>,
    %c0_4 = arith.constant 0 : index
    %c0_5 = arith.constant 0 : index
    %c1 = arith.constant 1 : index
    %3 = vector.load %arg1[%c0_4, %c0_5, %c1] : memref<1x4x384xbf16, #tpu.memory_space<vmem>>, vector<1x4x288xbf16>
    %4 = vector.shape_cast %3 : vector<1x4x288xbf16> to vector<4x288xbf16>
    %c4 = arith.constant 4 : index
    %c0_6 = arith.constant 0 : index
    %5 = vector.load %arg7[%c4, %c0_6] : memref<36x288xbf16, #tpu.memory_space<vmem>>, vector<4x288xbf16>
    tpu.vector_store %arg7[%c4, %c0_6], %4 {strides = array<i32>} : memref<36x288xbf16, #tpu.memory_space<vmem>>, vector<4x288xbf16>,
    %c0_7 = arith.constant 0 : index
    %c0_8 = arith.constant 0 : index
    %c2 = arith.constant 2 : index
    %6 = vector.load %arg1[%c0_7, %c0_8, %c2] : memref<1x4x384xbf16, #tpu.memory_space<vmem>>, vector<1x4x288xbf16>
    %7 = vector.shape_cast %6 : vector<1x4x288xbf16> to vector<4x288xbf16>
    %c8 = arith.constant 8 : index
    %c0_9 = arith.constant 0 : index
    %8 = vector.load %arg7[%c8, %c0_9] : memref<36x288xbf16, #tpu.memory_space<vmem>>, vector<4x288xbf16>
    tpu.vector_store %arg7[%c8, %c0_9], %7 {strides = array<i32>} : memref<36x288xbf16, #tpu.memory_space<vmem>>, vector<4x288xbf16>,
    %c0_10 = arith.constant 0 : index
    %c0_11 = arith.constant 0 : index
    %c18 = arith.constant 18 : index
    %9 = vector.load %arg1[%c0_10, %c0_11, %c18] : memref<1x4x384xbf16, #tpu.memory_space<vmem>>, vector<1x4x288xbf16>
    %10 = vector.shape_cast %9 : vector<1x4x288xbf16> to vector<4x288xbf16>
    %c12 = arith.constant 12 : index
    %c0_12 = arith.constant 0 : index
    %11 = vector.load %arg7[%c12, %c0_12] : memref<36x288xbf16, #tpu.memory_space<vmem>>, vector<4x288xbf16>
    tpu.vector_store %arg7[%c12, %c0_12], %10 {strides = array<i32>} : memref<36x288xbf16, #tpu.memory_space<vmem>>, vector<4x288xbf16>,
    %c0_13 = arith.constant 0 : index
    %c0_14 = arith.constant 0 : index
    %c19 = arith.constant 19 : index
    %12 = vector.load %arg1[%c0_13, %c0_14, %c19] : memref<1x4x384xbf16, #tpu.memory_space<vmem>>, vector<1x4x288xbf16>
    %13 = vector.shape_cast %12 : vector<1x4x288xbf16> to vector<4x288xbf16>
    %c16 = arith.constant 16 : index
    %c0_15 = arith.constant 0 : index
    %14 = vector.load %arg7[%c16, %c0_15] : memref<36x288xbf16, #tpu.memory_space<vmem>>, vector<4x288xbf16>
    tpu.vector_store %arg7[%c16, %c0_15], %13 {strides = array<i32>} : memref<36x288xbf16, #tpu.memory_space<vmem>>, vector<4x288xbf16>,
    %c0_16 = arith.constant 0 : index
    %c0_17 = arith.constant 0 : index
    %c20 = arith.constant 20 : index
    %15 = vector.load %arg1[%c0_16, %c0_17, %c20] : memref<1x4x384xbf16, #tpu.memory_space<vmem>>, vector<1x4x288xbf16>
    %16 = vector.shape_cast %15 : vector<1x4x288xbf16> to vector<4x288xbf16>
    %c20_18 = arith.constant 20 : index
    %c0_19 = arith.constant 0 : index
    %17 = vector.load %arg7[%c20_18, %c0_19] : memref<36x288xbf16, #tpu.memory_space<vmem>>, vector<4x288xbf16>
    tpu.vector_store %arg7[%c20_18, %c0_19], %16 {strides = array<i32>} : memref<36x288xbf16, #tpu.memory_space<vmem>>, vector<4x288xbf16>,
    %c0_20 = arith.constant 0 : index
    %c0_21 = arith.constant 0 : index
    %c36 = arith.constant 36 : index
    %18 = vector.load %arg1[%c0_20, %c0_21, %c36] : memref<1x4x384xbf16, #tpu.memory_space<vmem>>, vector<1x4x288xbf16>
    %19 = vector.shape_cast %18 : vector<1x4x288xbf16> to vector<4x288xbf16>
    %c24 = arith.constant 24 : index
    %c0_22 = arith.constant 0 : index
    %20 = vector.load %arg7[%c24, %c0_22] : memref<36x288xbf16, #tpu.memory_space<vmem>>, vector<4x288xbf16>
    tpu.vector_store %arg7[%c24, %c0_22], %19 {strides = array<i32>} : memref<36x288xbf16, #tpu.memory_space<vmem>>, vector<4x288xbf16>,
    %c0_23 = arith.constant 0 : index
    %c0_24 = arith.constant 0 : index
    %c37 = arith.constant 37 : index
    %21 = vector.load %arg1[%c0_23, %c0_24, %c37] : memref<1x4x384xbf16, #tpu.memory_space<vmem>>, vector<1x4x288xbf16>
    %22 = vector.shape_cast %21 : vector<1x4x288xbf16> to vector<4x288xbf16>
    %c28 = arith.constant 28 : index
    %c0_25 = arith.constant 0 : index
    %23 = vector.load %arg7[%c28, %c0_25] : memref<36x288xbf16, #tpu.memory_space<vmem>>, vector<4x288xbf16>
    tpu.vector_store %arg7[%c28, %c0_25], %22 {strides = array<i32>} : memref<36x288xbf16, #tpu.memory_space<vmem>>, vector<4x288xbf16>,
    %c0_26 = arith.constant 0 : index
    %c0_27 = arith.constant 0 : index
    %c38 = arith.constant 38 : index
    %24 = vector.load %arg1[%c0_26, %c0_27, %c38] : memref<1x4x384xbf16, #tpu.memory_space<vmem>>, vector<1x4x288xbf16>
    %25 = vector.shape_cast %24 : vector<1x4x288xbf16> to vector<4x288xbf16>
    %c32 = arith.constant 32 : index
    %c0_28 = arith.constant 0 : index
    %26 = vector.load %arg7[%c32, %c0_28] : memref<36x288xbf16, #tpu.memory_space<vmem>>, vector<4x288xbf16>
    tpu.vector_store %arg7[%c32, %c0_28], %25 {strides = array<i32>} : memref<36x288xbf16, #tpu.memory_space<vmem>>, vector<4x288xbf16>,
    %c0_29 = arith.constant 0 : index
    %c0_30 = arith.constant 0 : index
    %27 = vector.load %arg2[%c0_29, %c0_30] : memref<8x36xbf16, #tpu.memory_space<vmem>>, vector<8x36xbf16>
    %c0_31 = arith.constant 0 : index
    %c0_32 = arith.constant 0 : index
    %28 = vector.load %arg7[%c0_31, %c0_32] : memref<36x288xbf16, #tpu.memory_space<vmem>>, vector<36x288xbf16>
    %cst = arith.constant dense<0.000000e+00> : vector<8x288xf32>
    %29 = tpu.matmul %27, %28, %cst {dimension_numbers = #tpu.dot_dimension_numbers<[1], [0], [0], [1], [0, 0, 1, 1], [], []>} : vector<8x36xbf16>, vector<36x288xbf16>, vector<8x288xf32> -> vector<8x288xf32>
    %c0_33 = arith.constant 0 : index
    %c0_34 = arith.constant 0 : index
    %30 = vector.load %arg3[%c0_33, %c0_34] : memref<8x1xf32, #tpu.memory_space<vmem>>, vector<8x1xf32>
    %31 = vector.broadcast %30 : vector<8x1xf32> to vector<8x288xf32>
    %32 = arith.addf %29, %31 : vector<8x288xf32>
    %c0_35 = arith.constant 0 : index
    %c19_36 = arith.constant 19 : index
    %33 = vector.load %arg4[%c0_35, %c19_36] : memref<1x384xf32, #tpu.memory_space<vmem>>, vector<1x288xf32>
    %34 = vector.broadcast %33 : vector<1x288xf32> to vector<8x288xf32>
    %35 = arith.mulf %32, %34 : vector<8x288xf32>
    %cst_37 = arith.constant dense<0.000000e+00> : vector<8xf32>
    %36 = vector.multi_reduction <add>, %35, %cst_37 [1] : vector<8x288xf32> to vector<8xf32>
    %37 = vector.shape_cast %36 : vector<8xf32> to vector<8x1xf32>
    %c0_38 = arith.constant 0 : index
    %c0_39 = arith.constant 0 : index
    %c0_40 = arith.constant 0 : index
    %38 = vector.load %arg6[%c0_38, %c0_39, %c0_40] : memref<1x8x2xf32, #tpu.memory_space<vmem>>, vector<1x8x1xf32>
    %39 = vector.shape_cast %38 : vector<1x8x1xf32> to vector<8x1xf32>
    %40 = vector.shape_cast %37 : vector<8x1xf32> to vector<1x8x1xf32>
    tpu.vector_store %arg6[%c0_38, %c0_39, %c0_40], %40 {strides = array<i32>} : memref<1x8x2xf32, #tpu.memory_space<vmem>>, vector<1x8x1xf32>,
    %41 = arith.mulf %32, %32 : vector<8x288xf32>
    %42 = vector.broadcast %33 : vector<1x288xf32> to vector<8x288xf32>
    %43 = arith.mulf %41, %42 : vector<8x288xf32>
    %cst_41 = arith.constant dense<0.000000e+00> : vector<8xf32>
    %44 = vector.multi_reduction <add>, %43, %cst_41 [1] : vector<8x288xf32> to vector<8xf32>
    %45 = vector.shape_cast %44 : vector<8xf32> to vector<8x1xf32>
    %c0_42 = arith.constant 0 : index
    %c0_43 = arith.constant 0 : index
    %c1_44 = arith.constant 1 : index
    %46 = vector.load %arg6[%c0_42, %c0_43, %c1_44] : memref<1x8x2xf32, #tpu.memory_space<vmem>>, vector<1x8x1xf32>
    %47 = vector.shape_cast %46 : vector<1x8x1xf32> to vector<8x1xf32>
    %48 = vector.shape_cast %45 : vector<8x1xf32> to vector<1x8x1xf32>
    tpu.vector_store %arg6[%c0_42, %c0_43, %c1_44], %48 {strides = array<i32>} : memref<1x8x2xf32, #tpu.memory_space<vmem>>, vector<1x8x1xf32>,
    %cst_45 = arith.constant 0.000000e+00 : bf16
    %49 = vector.broadcast %cst_45 : bf16 to vector<1x8x384xbf16>
    %c0_46 = arith.constant 0 : index
    %c0_47 = arith.constant 0 : index
    %c0_48 = arith.constant 0 : index
    %50 = vector.load %arg5[%c0_46, %c0_47, %c0_48] : memref<1x8x384xbf16, #tpu.memory_space<vmem>>, vector<1x8x384xbf16>
    tpu.vector_store %arg5[%c0_46, %c0_47, %c0_48], %49 {strides = array<i32>} : memref<1x8x384xbf16, #tpu.memory_space<vmem>>, vector<1x8x384xbf16>,
    %51 = arith.truncf %32 : vector<8x288xf32> to vector<8x288xbf16>
    %c0_49 = arith.constant 0 : index
    %c0_50 = arith.constant 0 : index
    %c19_51 = arith.constant 19 : index
    %52 = vector.load %arg5[%c0_49, %c0_50, %c19_51] : memref<1x8x384xbf16, #tpu.memory_space<vmem>>, vector<1x8x288xbf16>
    %53 = vector.shape_cast %52 : vector<1x8x288xbf16> to vector<8x288xbf16>
    %54 = vector.shape_cast %51 : vector<8x288xbf16> to vector<1x8x288xbf16>
    tpu.vector_store %arg5[%c0_49, %c0_50, %c19_51], %54 {strides = array<i32>} : memref<1x8x384xbf16, #tpu.memory_space<vmem>>, vector<1x8x288xbf16>,
    return
  }
  func.func @transform_0(%arg0: i32) -> (i32, i32, i32) {
    %c0_i32 = arith.constant 0 : i32
    %c0_i32_0 = arith.constant 0 : i32
    %c0_i32_1 = arith.constant 0 : i32
    return %arg0, %c0_i32, %c0_i32_0 : i32, i32, i32
  }
  func.func @transform_1(%arg0: i32) -> (i32, i32) {
    %c0_i32 = arith.constant 0 : i32
    %c0_i32_0 = arith.constant 0 : i32
    %c0_i32_1 = arith.constant 0 : i32
    return %c0_i32, %c0_i32_0 : i32, i32
  }
  func.func @transform_2(%arg0: i32) -> (i32, i32) {
    %c0_i32 = arith.constant 0 : i32
    %c0_i32_0 = arith.constant 0 : i32
    %c0_i32_1 = arith.constant 0 : i32
    return %c0_i32, %c0_i32_0 : i32, i32
  }
  func.func @transform_3(%arg0: i32) -> (i32, i32) {
    %c0_i32 = arith.constant 0 : i32
    %c0_i32_0 = arith.constant 0 : i32
    %c0_i32_1 = arith.constant 0 : i32
    return %c0_i32, %c0_i32_0 : i32, i32
  }
  func.func @transform_4(%arg0: i32) -> (i32, i32, i32) {
    %c0_i32 = arith.constant 0 : i32
    %c0_i32_0 = arith.constant 0 : i32
    %c0_i32_1 = arith.constant 0 : i32
    return %arg0, %c0_i32, %c0_i32_0 : i32, i32, i32
  }
  func.func @transform_5(%arg0: i32) -> (i32, i32, i32) {
    %c0_i32 = arith.constant 0 : i32
    %c0_i32_0 = arith.constant 0 : i32
    %c0_i32_1 = arith.constant 0 : i32
    return %arg0, %c0_i32, %c0_i32_0 : i32, i32, i32
  }
}

module attributes {stable_mosaic.version = 11 : i64} {
  func.func @_bn_relu_store_kernel(%arg0: i32, %arg1: memref<1x8x384xbf16, #tpu.memory_space<vmem>>, %arg2: memref<8x1xf32, #tpu.memory_space<vmem>>, %arg3: memref<8x1xf32, #tpu.memory_space<vmem>>, %arg4: memref<1x8x256xf32, #tpu.memory_space<vmem>>) attributes {dimension_semantics = [#tpu.dimension_semantics<parallel>], iteration_bounds = array<i64: 2>, scalar_prefetch = 0 : i64, scratch_operands = 0 : i64, tpu.core_type = #tpu.core_type<tc>, window_params = [{transform_indices = @transform_0, window_bounds = array<i64: 1, 8, 384>}, {pipeline_mode = #tpu.pipeline_mode<synchronous>, transform_indices = @transform_1, window_bounds = array<i64: 8, 1>}, {pipeline_mode = #tpu.pipeline_mode<synchronous>, transform_indices = @transform_2, window_bounds = array<i64: 8, 1>}, {transform_indices = @transform_3, window_bounds = array<i64: 1, 8, 256>}]} {
    %c0 = arith.constant 0 : index
    %c0_0 = arith.constant 0 : index
    %c0_1 = arith.constant 0 : index
    %0 = vector.load %arg1[%c0, %c0_0, %c0_1] : memref<1x8x384xbf16, #tpu.memory_space<vmem>>, vector<1x8x384xbf16>
    %1 = vector.shape_cast %0 : vector<1x8x384xbf16> to vector<8x384xbf16>
    %c0_2 = arith.constant 0 : index
    %c0_3 = arith.constant 0 : index
    %2 = vector.load %arg2[%c0_2, %c0_3] : memref<8x1xf32, #tpu.memory_space<vmem>>, vector<8x1xf32>
    %3 = arith.extf %1 : vector<8x384xbf16> to vector<8x384xf32>
    %4 = vector.broadcast %2 : vector<8x1xf32> to vector<8x384xf32>
    %5 = arith.mulf %3, %4 : vector<8x384xf32>
    %c0_4 = arith.constant 0 : index
    %c0_5 = arith.constant 0 : index
    %6 = vector.load %arg3[%c0_4, %c0_5] : memref<8x1xf32, #tpu.memory_space<vmem>>, vector<8x1xf32>
    %7 = vector.broadcast %6 : vector<8x1xf32> to vector<8x384xf32>
    %8 = arith.addf %5, %7 : vector<8x384xf32>
    %cst = arith.constant 0.000000e+00 : f32
    %9 = vector.broadcast %cst : f32 to vector<8x384xf32>
    %10 = arith.maximumf %8, %9 : vector<8x384xf32>
    %11 = vector.extract_strided_slice %10 {offsets = [0, 19], sizes = [8, 16], strides = [1, 1]} : vector<8x384xf32> to vector<8x16xf32>
    %c0_6 = arith.constant 0 : index
    %c0_7 = arith.constant 0 : index
    %c0_8 = arith.constant 0 : index
    %12 = vector.load %arg4[%c0_6, %c0_7, %c0_8] : memref<1x8x256xf32, #tpu.memory_space<vmem>>, vector<1x8x16xf32>
    %13 = vector.shape_cast %12 : vector<1x8x16xf32> to vector<8x16xf32>
    %14 = vector.shape_cast %11 : vector<8x16xf32> to vector<1x8x16xf32>
    tpu.vector_store %arg4[%c0_6, %c0_7, %c0_8], %14 {strides = array<i32>} : memref<1x8x256xf32, #tpu.memory_space<vmem>>, vector<1x8x16xf32>,
    %15 = vector.extract_strided_slice %10 {offsets = [0, 37], sizes = [8, 16], strides = [1, 1]} : vector<8x384xf32> to vector<8x16xf32>
    %c0_9 = arith.constant 0 : index
    %c0_10 = arith.constant 0 : index
    %c16 = arith.constant 16 : index
    %16 = vector.load %arg4[%c0_9, %c0_10, %c16] : memref<1x8x256xf32, #tpu.memory_space<vmem>>, vector<1x8x16xf32>
    %17 = vector.shape_cast %16 : vector<1x8x16xf32> to vector<8x16xf32>
    %18 = vector.shape_cast %15 : vector<8x16xf32> to vector<1x8x16xf32>
    tpu.vector_store %arg4[%c0_9, %c0_10, %c16], %18 {strides = array<i32>} : memref<1x8x256xf32, #tpu.memory_space<vmem>>, vector<1x8x16xf32>,
    %19 = vector.extract_strided_slice %10 {offsets = [0, 55], sizes = [8, 16], strides = [1, 1]} : vector<8x384xf32> to vector<8x16xf32>
    %c0_11 = arith.constant 0 : index
    %c0_12 = arith.constant 0 : index
    %c32 = arith.constant 32 : index
    %20 = vector.load %arg4[%c0_11, %c0_12, %c32] : memref<1x8x256xf32, #tpu.memory_space<vmem>>, vector<1x8x16xf32>
    %21 = vector.shape_cast %20 : vector<1x8x16xf32> to vector<8x16xf32>
    %22 = vector.shape_cast %19 : vector<8x16xf32> to vector<1x8x16xf32>
    tpu.vector_store %arg4[%c0_11, %c0_12, %c32], %22 {strides = array<i32>} : memref<1x8x256xf32, #tpu.memory_space<vmem>>, vector<1x8x16xf32>,
    %23 = vector.extract_strided_slice %10 {offsets = [0, 73], sizes = [8, 16], strides = [1, 1]} : vector<8x384xf32> to vector<8x16xf32>
    %c0_13 = arith.constant 0 : index
    %c0_14 = arith.constant 0 : index
    %c48 = arith.constant 48 : index
    %24 = vector.load %arg4[%c0_13, %c0_14, %c48] : memref<1x8x256xf32, #tpu.memory_space<vmem>>, vector<1x8x16xf32>
    %25 = vector.shape_cast %24 : vector<1x8x16xf32> to vector<8x16xf32>
    %26 = vector.shape_cast %23 : vector<8x16xf32> to vector<1x8x16xf32>
    tpu.vector_store %arg4[%c0_13, %c0_14, %c48], %26 {strides = array<i32>} : memref<1x8x256xf32, #tpu.memory_space<vmem>>, vector<1x8x16xf32>,
    %27 = vector.extract_strided_slice %10 {offsets = [0, 91], sizes = [8, 16], strides = [1, 1]} : vector<8x384xf32> to vector<8x16xf32>
    %c0_15 = arith.constant 0 : index
    %c0_16 = arith.constant 0 : index
    %c64 = arith.constant 64 : index
    %28 = vector.load %arg4[%c0_15, %c0_16, %c64] : memref<1x8x256xf32, #tpu.memory_space<vmem>>, vector<1x8x16xf32>
    %29 = vector.shape_cast %28 : vector<1x8x16xf32> to vector<8x16xf32>
    %30 = vector.shape_cast %27 : vector<8x16xf32> to vector<1x8x16xf32>
    tpu.vector_store %arg4[%c0_15, %c0_16, %c64], %30 {strides = array<i32>} : memref<1x8x256xf32, #tpu.memory_space<vmem>>, vector<1x8x16xf32>,
    %31 = vector.extract_strided_slice %10 {offsets = [0, 109], sizes = [8, 16], strides = [1, 1]} : vector<8x384xf32> to vector<8x16xf32>
    %c0_17 = arith.constant 0 : index
    %c0_18 = arith.constant 0 : index
    %c80 = arith.constant 80 : index
    %32 = vector.load %arg4[%c0_17, %c0_18, %c80] : memref<1x8x256xf32, #tpu.memory_space<vmem>>, vector<1x8x16xf32>
    %33 = vector.shape_cast %32 : vector<1x8x16xf32> to vector<8x16xf32>
    %34 = vector.shape_cast %31 : vector<8x16xf32> to vector<1x8x16xf32>
    tpu.vector_store %arg4[%c0_17, %c0_18, %c80], %34 {strides = array<i32>} : memref<1x8x256xf32, #tpu.memory_space<vmem>>, vector<1x8x16xf32>,
    %35 = vector.extract_strided_slice %10 {offsets = [0, 127], sizes = [8, 16], strides = [1, 1]} : vector<8x384xf32> to vector<8x16xf32>
    %c0_19 = arith.constant 0 : index
    %c0_20 = arith.constant 0 : index
    %c96 = arith.constant 96 : index
    %36 = vector.load %arg4[%c0_19, %c0_20, %c96] : memref<1x8x256xf32, #tpu.memory_space<vmem>>, vector<1x8x16xf32>
    %37 = vector.shape_cast %36 : vector<1x8x16xf32> to vector<8x16xf32>
    %38 = vector.shape_cast %35 : vector<8x16xf32> to vector<1x8x16xf32>
    tpu.vector_store %arg4[%c0_19, %c0_20, %c96], %38 {strides = array<i32>} : memref<1x8x256xf32, #tpu.memory_space<vmem>>, vector<1x8x16xf32>,
    %39 = vector.extract_strided_slice %10 {offsets = [0, 145], sizes = [8, 16], strides = [1, 1]} : vector<8x384xf32> to vector<8x16xf32>
    %c0_21 = arith.constant 0 : index
    %c0_22 = arith.constant 0 : index
    %c112 = arith.constant 112 : index
    %40 = vector.load %arg4[%c0_21, %c0_22, %c112] : memref<1x8x256xf32, #tpu.memory_space<vmem>>, vector<1x8x16xf32>
    %41 = vector.shape_cast %40 : vector<1x8x16xf32> to vector<8x16xf32>
    %42 = vector.shape_cast %39 : vector<8x16xf32> to vector<1x8x16xf32>
    tpu.vector_store %arg4[%c0_21, %c0_22, %c112], %42 {strides = array<i32>} : memref<1x8x256xf32, #tpu.memory_space<vmem>>, vector<1x8x16xf32>,
    %43 = vector.extract_strided_slice %10 {offsets = [0, 163], sizes = [8, 16], strides = [1, 1]} : vector<8x384xf32> to vector<8x16xf32>
    %c0_23 = arith.constant 0 : index
    %c0_24 = arith.constant 0 : index
    %c128 = arith.constant 128 : index
    %44 = vector.load %arg4[%c0_23, %c0_24, %c128] : memref<1x8x256xf32, #tpu.memory_space<vmem>>, vector<1x8x16xf32>
    %45 = vector.shape_cast %44 : vector<1x8x16xf32> to vector<8x16xf32>
    %46 = vector.shape_cast %43 : vector<8x16xf32> to vector<1x8x16xf32>
    tpu.vector_store %arg4[%c0_23, %c0_24, %c128], %46 {strides = array<i32>} : memref<1x8x256xf32, #tpu.memory_space<vmem>>, vector<1x8x16xf32>,
    %47 = vector.extract_strided_slice %10 {offsets = [0, 181], sizes = [8, 16], strides = [1, 1]} : vector<8x384xf32> to vector<8x16xf32>
    %c0_25 = arith.constant 0 : index
    %c0_26 = arith.constant 0 : index
    %c144 = arith.constant 144 : index
    %48 = vector.load %arg4[%c0_25, %c0_26, %c144] : memref<1x8x256xf32, #tpu.memory_space<vmem>>, vector<1x8x16xf32>
    %49 = vector.shape_cast %48 : vector<1x8x16xf32> to vector<8x16xf32>
    %50 = vector.shape_cast %47 : vector<8x16xf32> to vector<1x8x16xf32>
    tpu.vector_store %arg4[%c0_25, %c0_26, %c144], %50 {strides = array<i32>} : memref<1x8x256xf32, #tpu.memory_space<vmem>>, vector<1x8x16xf32>,
    %51 = vector.extract_strided_slice %10 {offsets = [0, 199], sizes = [8, 16], strides = [1, 1]} : vector<8x384xf32> to vector<8x16xf32>
    %c0_27 = arith.constant 0 : index
    %c0_28 = arith.constant 0 : index
    %c160 = arith.constant 160 : index
    %52 = vector.load %arg4[%c0_27, %c0_28, %c160] : memref<1x8x256xf32, #tpu.memory_space<vmem>>, vector<1x8x16xf32>
    %53 = vector.shape_cast %52 : vector<1x8x16xf32> to vector<8x16xf32>
    %54 = vector.shape_cast %51 : vector<8x16xf32> to vector<1x8x16xf32>
    tpu.vector_store %arg4[%c0_27, %c0_28, %c160], %54 {strides = array<i32>} : memref<1x8x256xf32, #tpu.memory_space<vmem>>, vector<1x8x16xf32>,
    %55 = vector.extract_strided_slice %10 {offsets = [0, 217], sizes = [8, 16], strides = [1, 1]} : vector<8x384xf32> to vector<8x16xf32>
    %c0_29 = arith.constant 0 : index
    %c0_30 = arith.constant 0 : index
    %c176 = arith.constant 176 : index
    %56 = vector.load %arg4[%c0_29, %c0_30, %c176] : memref<1x8x256xf32, #tpu.memory_space<vmem>>, vector<1x8x16xf32>
    %57 = vector.shape_cast %56 : vector<1x8x16xf32> to vector<8x16xf32>
    %58 = vector.shape_cast %55 : vector<8x16xf32> to vector<1x8x16xf32>
    tpu.vector_store %arg4[%c0_29, %c0_30, %c176], %58 {strides = array<i32>} : memref<1x8x256xf32, #tpu.memory_space<vmem>>, vector<1x8x16xf32>,
    %59 = vector.extract_strided_slice %10 {offsets = [0, 235], sizes = [8, 16], strides = [1, 1]} : vector<8x384xf32> to vector<8x16xf32>
    %c0_31 = arith.constant 0 : index
    %c0_32 = arith.constant 0 : index
    %c192 = arith.constant 192 : index
    %60 = vector.load %arg4[%c0_31, %c0_32, %c192] : memref<1x8x256xf32, #tpu.memory_space<vmem>>, vector<1x8x16xf32>
    %61 = vector.shape_cast %60 : vector<1x8x16xf32> to vector<8x16xf32>
    %62 = vector.shape_cast %59 : vector<8x16xf32> to vector<1x8x16xf32>
    tpu.vector_store %arg4[%c0_31, %c0_32, %c192], %62 {strides = array<i32>} : memref<1x8x256xf32, #tpu.memory_space<vmem>>, vector<1x8x16xf32>,
    %63 = vector.extract_strided_slice %10 {offsets = [0, 253], sizes = [8, 16], strides = [1, 1]} : vector<8x384xf32> to vector<8x16xf32>
    %c0_33 = arith.constant 0 : index
    %c0_34 = arith.constant 0 : index
    %c208 = arith.constant 208 : index
    %64 = vector.load %arg4[%c0_33, %c0_34, %c208] : memref<1x8x256xf32, #tpu.memory_space<vmem>>, vector<1x8x16xf32>
    %65 = vector.shape_cast %64 : vector<1x8x16xf32> to vector<8x16xf32>
    %66 = vector.shape_cast %63 : vector<8x16xf32> to vector<1x8x16xf32>
    tpu.vector_store %arg4[%c0_33, %c0_34, %c208], %66 {strides = array<i32>} : memref<1x8x256xf32, #tpu.memory_space<vmem>>, vector<1x8x16xf32>,
    %67 = vector.extract_strided_slice %10 {offsets = [0, 271], sizes = [8, 16], strides = [1, 1]} : vector<8x384xf32> to vector<8x16xf32>
    %c0_35 = arith.constant 0 : index
    %c0_36 = arith.constant 0 : index
    %c224 = arith.constant 224 : index
    %68 = vector.load %arg4[%c0_35, %c0_36, %c224] : memref<1x8x256xf32, #tpu.memory_space<vmem>>, vector<1x8x16xf32>
    %69 = vector.shape_cast %68 : vector<1x8x16xf32> to vector<8x16xf32>
    %70 = vector.shape_cast %67 : vector<8x16xf32> to vector<1x8x16xf32>
    tpu.vector_store %arg4[%c0_35, %c0_36, %c224], %70 {strides = array<i32>} : memref<1x8x256xf32, #tpu.memory_space<vmem>>, vector<1x8x16xf32>,
    %71 = vector.extract_strided_slice %10 {offsets = [0, 289], sizes = [8, 16], strides = [1, 1]} : vector<8x384xf32> to vector<8x16xf32>
    %c0_37 = arith.constant 0 : index
    %c0_38 = arith.constant 0 : index
    %c240 = arith.constant 240 : index
    %72 = vector.load %arg4[%c0_37, %c0_38, %c240] : memref<1x8x256xf32, #tpu.memory_space<vmem>>, vector<1x8x16xf32>
    %73 = vector.shape_cast %72 : vector<1x8x16xf32> to vector<8x16xf32>
    %74 = vector.shape_cast %71 : vector<8x16xf32> to vector<1x8x16xf32>
    tpu.vector_store %arg4[%c0_37, %c0_38, %c240], %74 {strides = array<i32>} : memref<1x8x256xf32, #tpu.memory_space<vmem>>, vector<1x8x16xf32>,
    return
  }
  func.func @transform_0(%arg0: i32) -> (i32, i32, i32) {
    %c0_i32 = arith.constant 0 : i32
    %c0_i32_0 = arith.constant 0 : i32
    %c0_i32_1 = arith.constant 0 : i32
    return %arg0, %c0_i32, %c0_i32_0 : i32, i32, i32
  }
  func.func @transform_1(%arg0: i32) -> (i32, i32) {
    %c0_i32 = arith.constant 0 : i32
    %c0_i32_0 = arith.constant 0 : i32
    %c0_i32_1 = arith.constant 0 : i32
    return %c0_i32, %c0_i32_0 : i32, i32
  }
  func.func @transform_2(%arg0: i32) -> (i32, i32) {
    %c0_i32 = arith.constant 0 : i32
    %c0_i32_0 = arith.constant 0 : i32
    %c0_i32_1 = arith.constant 0 : i32
    return %c0_i32, %c0_i32_0 : i32, i32
  }
  func.func @transform_3(%arg0: i32) -> (i32, i32, i32) {
    %c0_i32 = arith.constant 0 : i32
    %c0_i32_0 = arith.constant 0 : i32
    %c0_i32_1 = arith.constant 0 : i32
    return %arg0, %c0_i32, %c0_i32_0 : i32, i32, i32
  }
}

module attributes {stable_mosaic.version = 11 : i64} {
  func.func @_bn_relu_conv_stats_kernel(%arg0: i32, %arg1: memref<1x8x384xbf16, #tpu.memory_space<vmem>>, %arg2: memref<8x1xf32, #tpu.memory_space<vmem>>, %arg3: memref<8x1xf32, #tpu.memory_space<vmem>>, %arg4: memref<8x72xbf16, #tpu.memory_space<vmem>>, %arg5: memref<8x1xf32, #tpu.memory_space<vmem>>, %arg6: memref<1x384xf32, #tpu.memory_space<vmem>>, %arg7: memref<1x8x384xbf16, #tpu.memory_space<vmem>>, %arg8: memref<1x8x2xf32, #tpu.memory_space<vmem>>, %arg9: memref<8x384xbf16, #tpu.memory_space<vmem>>, %arg10: memref<72x288xbf16, #tpu.memory_space<vmem>>) attributes {dimension_semantics = [#tpu.dimension_semantics<parallel>], iteration_bounds = array<i64: 2>, scalar_prefetch = 0 : i64, scratch_operands = 2 : i64, tpu.core_type = #tpu.core_type<tc>, window_params = [{transform_indices = @transform_0, window_bounds = array<i64: 1, 8, 384>}, {pipeline_mode = #tpu.pipeline_mode<synchronous>, transform_indices = @transform_1, window_bounds = array<i64: 8, 1>}, {pipeline_mode = #tpu.pipeline_mode<synchronous>, transform_indices = @transform_2, window_bounds = array<i64: 8, 1>}, {pipeline_mode = #tpu.pipeline_mode<synchronous>, transform_indices = @transform_3, window_bounds = array<i64: 8, 72>}, {pipeline_mode = #tpu.pipeline_mode<synchronous>, transform_indices = @transform_4, window_bounds = array<i64: 8, 1>}, {pipeline_mode = #tpu.pipeline_mode<synchronous>, transform_indices = @transform_5, window_bounds = array<i64: 1, 384>}, {transform_indices = @transform_6, window_bounds = array<i64: 1, 8, 384>}, {transform_indices = @transform_7, window_bounds = array<i64: 1, 8, 2>}]} {
    %c0 = arith.constant 0 : index
    %c0_0 = arith.constant 0 : index
    %c0_1 = arith.constant 0 : index
    %0 = vector.load %arg1[%c0, %c0_0, %c0_1] : memref<1x8x384xbf16, #tpu.memory_space<vmem>>, vector<1x8x384xbf16>
    %1 = vector.shape_cast %0 : vector<1x8x384xbf16> to vector<8x384xbf16>
    %c0_2 = arith.constant 0 : index
    %c0_3 = arith.constant 0 : index
    %2 = vector.load %arg2[%c0_2, %c0_3] : memref<8x1xf32, #tpu.memory_space<vmem>>, vector<8x1xf32>
    %3 = arith.extf %1 : vector<8x384xbf16> to vector<8x384xf32>
    %4 = vector.broadcast %2 : vector<8x1xf32> to vector<8x384xf32>
    %5 = arith.mulf %3, %4 : vector<8x384xf32>
    %c0_4 = arith.constant 0 : index
    %c0_5 = arith.constant 0 : index
    %6 = vector.load %arg3[%c0_4, %c0_5] : memref<8x1xf32, #tpu.memory_space<vmem>>, vector<8x1xf32>
    %7 = vector.broadcast %6 : vector<8x1xf32> to vector<8x384xf32>
    %8 = arith.addf %5, %7 : vector<8x384xf32>
    %cst = arith.constant 0.000000e+00 : f32
    %9 = vector.broadcast %cst : f32 to vector<8x384xf32>
    %10 = arith.maximumf %8, %9 : vector<8x384xf32>
    %c0_6 = arith.constant 0 : index
    %c0_7 = arith.constant 0 : index
    %11 = vector.load %arg6[%c0_6, %c0_7] : memref<1x384xf32, #tpu.memory_space<vmem>>, vector<1x384xf32>
    %12 = vector.broadcast %11 : vector<1x384xf32> to vector<8x384xf32>
    %13 = arith.mulf %10, %12 : vector<8x384xf32>
    %14 = arith.truncf %13 : vector<8x384xf32> to vector<8x384xbf16>
    %c0_8 = arith.constant 0 : index
    %c0_9 = arith.constant 0 : index
    %15 = vector.load %arg9[%c0_8, %c0_9] : memref<8x384xbf16, #tpu.memory_space<vmem>>, vector<8x384xbf16>
    tpu.vector_store %arg9[%c0_8, %c0_9], %14 {strides = array<i32>} : memref<8x384xbf16, #tpu.memory_space<vmem>>, vector<8x384xbf16>,
    %c0_10 = arith.constant 0 : index
    %c0_11 = arith.constant 0 : index
    %16 = vector.load %arg9[%c0_10, %c0_11] : memref<8x384xbf16, #tpu.memory_space<vmem>>, vector<8x288xbf16>
    %c0_12 = arith.constant 0 : index
    %c0_13 = arith.constant 0 : index
    %17 = vector.load %arg10[%c0_12, %c0_13] : memref<72x288xbf16, #tpu.memory_space<vmem>>, vector<8x288xbf16>
    tpu.vector_store %arg10[%c0_12, %c0_13], %16 {strides = array<i32>} : memref<72x288xbf16, #tpu.memory_space<vmem>>, vector<8x288xbf16>,
    %c0_14 = arith.constant 0 : index
    %c1 = arith.constant 1 : index
    %18 = vector.load %arg9[%c0_14, %c1] : memref<8x384xbf16, #tpu.memory_space<vmem>>, vector<8x288xbf16>
    %c8 = arith.constant 8 : index
    %c0_15 = arith.constant 0 : index
    %19 = vector.load %arg10[%c8, %c0_15] : memref<72x288xbf16, #tpu.memory_space<vmem>>, vector<8x288xbf16>
    tpu.vector_store %arg10[%c8, %c0_15], %18 {strides = array<i32>} : memref<72x288xbf16, #tpu.memory_space<vmem>>, vector<8x288xbf16>,
    %c0_16 = arith.constant 0 : index
    %c2 = arith.constant 2 : index
    %20 = vector.load %arg9[%c0_16, %c2] : memref<8x384xbf16, #tpu.memory_space<vmem>>, vector<8x288xbf16>
    %c16 = arith.constant 16 : index
    %c0_17 = arith.constant 0 : index
    %21 = vector.load %arg10[%c16, %c0_17] : memref<72x288xbf16, #tpu.memory_space<vmem>>, vector<8x288xbf16>
    tpu.vector_store %arg10[%c16, %c0_17], %20 {strides = array<i32>} : memref<72x288xbf16, #tpu.memory_space<vmem>>, vector<8x288xbf16>,
    %c0_18 = arith.constant 0 : index
    %c18 = arith.constant 18 : index
    %22 = vector.load %arg9[%c0_18, %c18] : memref<8x384xbf16, #tpu.memory_space<vmem>>, vector<8x288xbf16>
    %c24 = arith.constant 24 : index
    %c0_19 = arith.constant 0 : index
    %23 = vector.load %arg10[%c24, %c0_19] : memref<72x288xbf16, #tpu.memory_space<vmem>>, vector<8x288xbf16>
    tpu.vector_store %arg10[%c24, %c0_19], %22 {strides = array<i32>} : memref<72x288xbf16, #tpu.memory_space<vmem>>, vector<8x288xbf16>,
    %c0_20 = arith.constant 0 : index
    %c19 = arith.constant 19 : index
    %24 = vector.load %arg9[%c0_20, %c19] : memref<8x384xbf16, #tpu.memory_space<vmem>>, vector<8x288xbf16>
    %c32 = arith.constant 32 : index
    %c0_21 = arith.constant 0 : index
    %25 = vector.load %arg10[%c32, %c0_21] : memref<72x288xbf16, #tpu.memory_space<vmem>>, vector<8x288xbf16>
    tpu.vector_store %arg10[%c32, %c0_21], %24 {strides = array<i32>} : memref<72x288xbf16, #tpu.memory_space<vmem>>, vector<8x288xbf16>,
    %c0_22 = arith.constant 0 : index
    %c20 = arith.constant 20 : index
    %26 = vector.load %arg9[%c0_22, %c20] : memref<8x384xbf16, #tpu.memory_space<vmem>>, vector<8x288xbf16>
    %c40 = arith.constant 40 : index
    %c0_23 = arith.constant 0 : index
    %27 = vector.load %arg10[%c40, %c0_23] : memref<72x288xbf16, #tpu.memory_space<vmem>>, vector<8x288xbf16>
    tpu.vector_store %arg10[%c40, %c0_23], %26 {strides = array<i32>} : memref<72x288xbf16, #tpu.memory_space<vmem>>, vector<8x288xbf16>,
    %c0_24 = arith.constant 0 : index
    %c36 = arith.constant 36 : index
    %28 = vector.load %arg9[%c0_24, %c36] : memref<8x384xbf16, #tpu.memory_space<vmem>>, vector<8x288xbf16>
    %c48 = arith.constant 48 : index
    %c0_25 = arith.constant 0 : index
    %29 = vector.load %arg10[%c48, %c0_25] : memref<72x288xbf16, #tpu.memory_space<vmem>>, vector<8x288xbf16>
    tpu.vector_store %arg10[%c48, %c0_25], %28 {strides = array<i32>} : memref<72x288xbf16, #tpu.memory_space<vmem>>, vector<8x288xbf16>,
    %c0_26 = arith.constant 0 : index
    %c37 = arith.constant 37 : index
    %30 = vector.load %arg9[%c0_26, %c37] : memref<8x384xbf16, #tpu.memory_space<vmem>>, vector<8x288xbf16>
    %c56 = arith.constant 56 : index
    %c0_27 = arith.constant 0 : index
    %31 = vector.load %arg10[%c56, %c0_27] : memref<72x288xbf16, #tpu.memory_space<vmem>>, vector<8x288xbf16>
    tpu.vector_store %arg10[%c56, %c0_27], %30 {strides = array<i32>} : memref<72x288xbf16, #tpu.memory_space<vmem>>, vector<8x288xbf16>,
    %c0_28 = arith.constant 0 : index
    %c38 = arith.constant 38 : index
    %32 = vector.load %arg9[%c0_28, %c38] : memref<8x384xbf16, #tpu.memory_space<vmem>>, vector<8x288xbf16>
    %c64 = arith.constant 64 : index
    %c0_29 = arith.constant 0 : index
    %33 = vector.load %arg10[%c64, %c0_29] : memref<72x288xbf16, #tpu.memory_space<vmem>>, vector<8x288xbf16>
    tpu.vector_store %arg10[%c64, %c0_29], %32 {strides = array<i32>} : memref<72x288xbf16, #tpu.memory_space<vmem>>, vector<8x288xbf16>,
    %c0_30 = arith.constant 0 : index
    %c0_31 = arith.constant 0 : index
    %34 = vector.load %arg4[%c0_30, %c0_31] : memref<8x72xbf16, #tpu.memory_space<vmem>>, vector<8x72xbf16>
    %c0_32 = arith.constant 0 : index
    %c0_33 = arith.constant 0 : index
    %35 = vector.load %arg10[%c0_32, %c0_33] : memref<72x288xbf16, #tpu.memory_space<vmem>>, vector<72x288xbf16>
    %cst_34 = arith.constant dense<0.000000e+00> : vector<8x288xf32>
    %36 = tpu.matmul %34, %35, %cst_34 {dimension_numbers = #tpu.dot_dimension_numbers<[1], [0], [0], [1], [0, 0, 1, 1], [], []>} : vector<8x72xbf16>, vector<72x288xbf16>, vector<8x288xf32> -> vector<8x288xf32>
    %c0_35 = arith.constant 0 : index
    %c0_36 = arith.constant 0 : index
    %37 = vector.load %arg5[%c0_35, %c0_36] : memref<8x1xf32, #tpu.memory_space<vmem>>, vector<8x1xf32>
    %38 = vector.broadcast %37 : vector<8x1xf32> to vector<8x288xf32>
    %39 = arith.addf %36, %38 : vector<8x288xf32>
    %c0_37 = arith.constant 0 : index
    %c19_38 = arith.constant 19 : index
    %40 = vector.load %arg6[%c0_37, %c19_38] : memref<1x384xf32, #tpu.memory_space<vmem>>, vector<1x288xf32>
    %41 = vector.broadcast %40 : vector<1x288xf32> to vector<8x288xf32>
    %42 = arith.mulf %39, %41 : vector<8x288xf32>
    %cst_39 = arith.constant dense<0.000000e+00> : vector<8xf32>
    %43 = vector.multi_reduction <add>, %42, %cst_39 [1] : vector<8x288xf32> to vector<8xf32>
    %44 = vector.shape_cast %43 : vector<8xf32> to vector<8x1xf32>
    %c0_40 = arith.constant 0 : index
    %c0_41 = arith.constant 0 : index
    %c0_42 = arith.constant 0 : index
    %45 = vector.load %arg8[%c0_40, %c0_41, %c0_42] : memref<1x8x2xf32, #tpu.memory_space<vmem>>, vector<1x8x1xf32>
    %46 = vector.shape_cast %45 : vector<1x8x1xf32> to vector<8x1xf32>
    %47 = vector.shape_cast %44 : vector<8x1xf32> to vector<1x8x1xf32>
    tpu.vector_store %arg8[%c0_40, %c0_41, %c0_42], %47 {strides = array<i32>} : memref<1x8x2xf32, #tpu.memory_space<vmem>>, vector<1x8x1xf32>,
    %48 = arith.mulf %39, %39 : vector<8x288xf32>
    %49 = vector.broadcast %40 : vector<1x288xf32> to vector<8x288xf32>
    %50 = arith.mulf %48, %49 : vector<8x288xf32>
    %cst_43 = arith.constant dense<0.000000e+00> : vector<8xf32>
    %51 = vector.multi_reduction <add>, %50, %cst_43 [1] : vector<8x288xf32> to vector<8xf32>
    %52 = vector.shape_cast %51 : vector<8xf32> to vector<8x1xf32>
    %c0_44 = arith.constant 0 : index
    %c0_45 = arith.constant 0 : index
    %c1_46 = arith.constant 1 : index
    %53 = vector.load %arg8[%c0_44, %c0_45, %c1_46] : memref<1x8x2xf32, #tpu.memory_space<vmem>>, vector<1x8x1xf32>
    %54 = vector.shape_cast %53 : vector<1x8x1xf32> to vector<8x1xf32>
    %55 = vector.shape_cast %52 : vector<8x1xf32> to vector<1x8x1xf32>
    tpu.vector_store %arg8[%c0_44, %c0_45, %c1_46], %55 {strides = array<i32>} : memref<1x8x2xf32, #tpu.memory_space<vmem>>, vector<1x8x1xf32>,
    %cst_47 = arith.constant 0.000000e+00 : bf16
    %56 = vector.broadcast %cst_47 : bf16 to vector<1x8x384xbf16>
    %c0_48 = arith.constant 0 : index
    %c0_49 = arith.constant 0 : index
    %c0_50 = arith.constant 0 : index
    %57 = vector.load %arg7[%c0_48, %c0_49, %c0_50] : memref<1x8x384xbf16, #tpu.memory_space<vmem>>, vector<1x8x384xbf16>
    tpu.vector_store %arg7[%c0_48, %c0_49, %c0_50], %56 {strides = array<i32>} : memref<1x8x384xbf16, #tpu.memory_space<vmem>>, vector<1x8x384xbf16>,
    %58 = arith.truncf %39 : vector<8x288xf32> to vector<8x288xbf16>
    %c0_51 = arith.constant 0 : index
    %c0_52 = arith.constant 0 : index
    %c19_53 = arith.constant 19 : index
    %59 = vector.load %arg7[%c0_51, %c0_52, %c19_53] : memref<1x8x384xbf16, #tpu.memory_space<vmem>>, vector<1x8x288xbf16>
    %60 = vector.shape_cast %59 : vector<1x8x288xbf16> to vector<8x288xbf16>
    %61 = vector.shape_cast %58 : vector<8x288xbf16> to vector<1x8x288xbf16>
    tpu.vector_store %arg7[%c0_51, %c0_52, %c19_53], %61 {strides = array<i32>} : memref<1x8x384xbf16, #tpu.memory_space<vmem>>, vector<1x8x288xbf16>,
    return
  }
  func.func @transform_0(%arg0: i32) -> (i32, i32, i32) {
    %c0_i32 = arith.constant 0 : i32
    %c0_i32_0 = arith.constant 0 : i32
    %c0_i32_1 = arith.constant 0 : i32
    return %arg0, %c0_i32, %c0_i32_0 : i32, i32, i32
  }
  func.func @transform_1(%arg0: i32) -> (i32, i32) {
    %c0_i32 = arith.constant 0 : i32
    %c0_i32_0 = arith.constant 0 : i32
    %c0_i32_1 = arith.constant 0 : i32
    return %c0_i32, %c0_i32_0 : i32, i32
  }
  func.func @transform_2(%arg0: i32) -> (i32, i32) {
    %c0_i32 = arith.constant 0 : i32
    %c0_i32_0 = arith.constant 0 : i32
    %c0_i32_1 = arith.constant 0 : i32
    return %c0_i32, %c0_i32_0 : i32, i32
  }
  func.func @transform_3(%arg0: i32) -> (i32, i32) {
    %c0_i32 = arith.constant 0 : i32
    %c0_i32_0 = arith.constant 0 : i32
    %c0_i32_1 = arith.constant 0 : i32
    return %c0_i32, %c0_i32_0 : i32, i32
  }
  func.func @transform_4(%arg0: i32) -> (i32, i32) {
    %c0_i32 = arith.constant 0 : i32
    %c0_i32_0 = arith.constant 0 : i32
    %c0_i32_1 = arith.constant 0 : i32
    return %c0_i32, %c0_i32_0 : i32, i32
  }
  func.func @transform_5(%arg0: i32) -> (i32, i32) {
    %c0_i32 = arith.constant 0 : i32
    %c0_i32_0 = arith.constant 0 : i32
    %c0_i32_1 = arith.constant 0 : i32
    return %c0_i32, %c0_i32_0 : i32, i32
  }
  func.func @transform_6(%arg0: i32) -> (i32, i32, i32) {
    %c0_i32 = arith.constant 0 : i32
    %c0_i32_0 = arith.constant 0 : i32
    %c0_i32_1 = arith.constant 0 : i32
    return %arg0, %c0_i32, %c0_i32_0 : i32, i32, i32
  }
  func.func @transform_7(%arg0: i32) -> (i32, i32, i32) {
    %c0_i32 = arith.constant 0 : i32
    %c0_i32_0 = arith.constant 0 : i32
    %c0_i32_1 = arith.constant 0 : i32
    return %arg0, %c0_i32, %c0_i32_0 : i32, i32, i32
  }
}

</mosaic_0001>

<bundles_post_ra>
// kernel: _double_conv_impl.5
= control target key start
LH: loop header
LB: loop body
LE: loop exit
PB: predicated region body
PF: predicated region fallthrough
CT: control target
= control target key end

     0   :  { %s418_s12 = smov 0   ;;  %s463_s0 = inlined_call_operand.vmem [shape: bf16[2,8,384], index: 0, kind: input, shape index: {}]   ;;  %s464_s1 = inlined_call_operand.vmem [shape: f32[8,1], index: 1, kind: input, shape index: {}]   ;;  %s465_s2 = inlined_call_operand.vmem [shape: f32[8,1], index: 2, kind: input, shape index: {}]   ;;  %s466_s3 = inlined_call_operand.vmem [shape: f32[2,8,256], index: 3, kind: output, shape index: {}]  }
   0x1 LB: > { %s335_s13 = sadd.s32 4294967295, %s379_s12   ;;  %p339_p0 = scmp.ge.s32.totalorder %s379_s12, 1  ;;  %s379_s12 = sphi %s418_s12, %s13_s12  }
   0x2   : > { %p137_p1 = scmp.lt.s32.totalorder %s379_s12, 3 }
   0x4   : > { %p138_p2 = pnand %p339_p0, %p137_p1 }
   0x5   : > { %v173_v0 = vld [vmem:[%s464_s1] sm:$0xff] (!%p138_p2)  ;;  %v381_v1 = vmov (!%p138_p2), 0   ;;  %p161_p3 = scmp.lt.s32.totalorder (!%p138_p2), %s335_s13, 1  ;;  %s382_s22 = smov (!%p138_p2), 107   ;;  %vm201_vm0 = vcmask (!%p138_p2), 130048   ;;  %vm206_vm1 = vcmask (!%p138_p2), 261248  }
   0x6   : > { %141 = sbr.rel (%p138_p2) target bundleno = 295 (0x127), region = 32  ;;  %372 = vset.pattern.permute.xlu0 (!%p138_p2), %v381_v1  ;;  %v185_v2 = vld [vmem:[%s465_s2] sm:$0xff] (!%p138_p2)  ;;  %s383_s23 = smov (!%p138_p2), 109   ;;  %vm211_vm2 = vcmask (!%p138_p2), 392448   ;;  %vm216_vm3 = vcmask (!%p138_p2), 523648   ;;  %vm221_vm4 = vcmask (!%p138_p2), 654848  }
   0x7   : > { %179 = vperm.xlu0 (!%p138_p2), %372, %v173_v0   ;;  %s384_s24 = smov (!%p138_p2), 105   ;;  %s385_s25 = smov (!%p138_p2), 93   ;;  %vm226_vm5 = vcmask (!%p138_p2), 786048   ;;  %vm268_vm6 = vcmask (!%p138_p2), 678912   ;;  %vm233_vm7 = vcmask (!%p138_p2), 793600   ;;  %vm236_vm8 = vcmask (!%p138_p2), 917248  }
   0x8   : > { %s386_s26 = smov (!%p138_p2), 103   ;;  %s387_s27 = smov (!%p138_p2), 91   ;;  %vm241_vm9 = vcmask (!%p138_p2), 1048448  }
   0x9   : > { %s388_s28 = smov (!%p138_p2), 101   ;;  %s389_s29 = smov (!%p138_p2), 89  }
   0xa   : > { %s390_s30 = smov (!%p138_p2), 83   ;;  %s391_s4 = smov (!%p138_p2), 87  }
   0xb   : > { %188 = vperm.xlu0 (!%p138_p2), %372, %v185_v2   ;;  %s392_s5 = smov (!%p138_p2), 99   ;;  %s393_s6 = smov (!%p138_p2), 85  }
   0xc   : > { %s394_s7 = smov (!%p138_p2), 97   ;;  %s395_s8 = smov (!%p138_p2), 95  }
   0xd   : > { %s468_s13 = smov (!%p161_p3, %s335_s13), 1  ;;  %s396_s9 = smov 81  }
   0xe   : > { %s346_s18 = smul.u32 12, %s468_s13  ;;  %s397_s10 = smov 79  }
   0xf   : > { %s345_s11 = sshll.u32 %s468_s13, 4 }
  0x10   : > { %s165_s21 = scalar_lea.vmem %s463_s0, %s346_s18  ;;  %s442_s16 = scalar_lea.vmem %s466_s3, %s345_s11 }
  0x11   : > { %v171_v3 = vld [vmem:[%s165_s21] sm:$0xff]  ;;  %v172_v14 = vld [vmem:[%s165_s21 + $0x8] sm:$0xf] }
  0x12   : > { %v174_v4 = vunpack.c.l.bf16 %v171_v3  ;;  %v175_v6 = vunpack.c.h.bf16 %v171_v3  ;;  %v176_v15 = vunpack.c.l.bf16 %v172_v14 }
  0x86   : > { %v180_v5 = vpop.permute.xlu0 %179 }
  0x87   : > { %v182_v7 = vmul.f32 %v180_v5, %v174_v4  ;;  %v183_v9 = vmul.f32 %v180_v5, %v175_v6  ;;  %v184_v16 = vmul.f32 %v180_v5, %v176_v15 }
  0x8a   : > { %v189_v8 = vpop.permute.xlu0 %188 }
  0x8b   : > { %v191_v10 = vadd.f32 %v189_v8, %v182_v7  ;;  %v192_v11 = vadd.f32 %v189_v8, %v183_v9  ;;  %v193_v17 = vadd.f32 %v189_v8, %v184_v16 }
  0x8d   : > { %v194_v12 = vmax.f32 %v191_v10, 0.0  ;;  %v195_v13 = vmax.f32 %v192_v11, 0.0  ;;  %v196_v18 = vmax.f32 %v193_v17, 0.0 }
  0x8f   : > { %203 = vrot.lane.b32.xlu0 %v194_v12, %s382_s22  ;;  %198 = vrot.lane.b32.xlu1 %v194_v12, %s383_s23 }
  0x93   : > { %208 = vrot.lane.b32.xlu0 %v194_v12, %s384_s24  ;;  %243 = vrot.lane.b32.xlu1 %v195_v13, %s385_s25 }
  0x97   : > { %213 = vrot.lane.b32.xlu0 %v194_v12, %s386_s26  ;;  %247 = vrot.lane.b32.xlu1 %v195_v13, %s387_s27 }
  0x9b   : > { %218 = vrot.lane.b32.xlu0 %v194_v12, %s388_s28  ;;  %251 = vrot.lane.b32.xlu1 %v195_v13, %s389_s29 }
  0x9f   : > { %264 = vrot.lane.b32.xlu0 %v195_v13, %s390_s30  ;;  %255 = vrot.lane.b32.xlu1 %v195_v13, %s391_s4 }
  0xa3   : > { %223 = vrot.lane.b32.xlu0 %v194_v12, %s392_s5  ;;  %259 = vrot.lane.b32.xlu1 %v195_v13, %s393_s6 }
  0xa7   : > { %231 = vrot.lane.b32.xlu0 %v195_v13, %s394_s7  ;;  %266 = vrot.lane.b32.xlu1 %v196_v18, %s390_s30 }
  0xab   : > { %238 = vrot.lane.b32.xlu0 %v195_v13, %s395_s8  ;;  %229 = vrot.lane.b32.xlu1 %v194_v12, %s394_s7 }
  0xaf   : > { %272 = vrot.lane.b32.xlu1 %v196_v18, %s396_s9 }
  0xb3   : > { %276 = vrot.lane.b32.xlu1 %v196_v18, %s397_s10 }
 0x101   : > { %v204_v19 = vpop.permute.xlu0 %203  ;;  %v199_v20 = vpop.permute.xlu1 %198 }
 0x102   : > { %202 = vst.msk [vmem:[%s442_s16] sm:$0xff] %vm201_vm0, %v199_v20 }
 0x103   : > { %207 = vst.msk [vmem:[%s442_s16] sm:$0xff] %vm206_vm1, %v204_v19 }
 0x105   : > { %v209_v21 = vpop.permute.xlu0 %208  ;;  %v244_v22 = vpop.permute.xlu1 %243 }
 0x106   : > { %212 = vst.msk [vmem:[%s442_s16] sm:$0xff] %vm211_vm2, %v209_v21 }
 0x107   : > { %246 = vst.msk [vmem:[%s442_s16 + $0x8] sm:$0xff] %vm201_vm0, %v244_v22 }
 0x109   : > { %v214_v23 = vpop.permute.xlu0 %213  ;;  %v248_v24 = vpop.permute.xlu1 %247 }
 0x10a   : > { %217 = vst.msk [vmem:[%s442_s16] sm:$0xff] %vm216_vm3, %v214_v23 }
 0x10b   : > { %250 = vst.msk [vmem:[%s442_s16 + $0x8] sm:$0xff] %vm206_vm1, %v248_v24 }
 0x10d   : > { %v219_v25 = vpop.permute.xlu0 %218  ;;  %v252_v26 = vpop.permute.xlu1 %251 }
 0x10e   : > { %222 = vst.msk [vmem:[%s442_s16] sm:$0xff] %vm221_vm4, %v219_v25 }
 0x10f   : > { %254 = vst.msk [vmem:[%s442_s16 + $0x8] sm:$0xff] %vm211_vm2, %v252_v26 }
 0x111   : > { %v265_v27 = vpop.permute.xlu0 %264  ;;  %v256_v28 = vpop.permute.xlu1 %255 }
 0x112   : > { %258 = vst.msk [vmem:[%s442_s16 + $0x8] sm:$0xff] %vm216_vm3, %v256_v28 }
 0x115   : > { %v224_v29 = vpop.permute.xlu0 %223  ;;  %v260_v30 = vpop.permute.xlu1 %259 }
 0x116   : > { %227 = vst.msk [vmem:[%s442_s16] sm:$0xff] %vm226_vm5, %v224_v29 }
 0x117   : > { %262 = vst.msk [vmem:[%s442_s16 + $0x8] sm:$0xff] %vm221_vm4, %v260_v30 }
 0x119   : > { %v232_v31 = vpop.permute.xlu0 %231  ;;  %v267_v32 = vpop.permute.xlu1 %266 }
 0x11a   : > { %v269_v33 = vsel %vm268_vm6, %v265_v27, %v267_v32 }
 0x11b   : > { %271 = vst.msk [vmem:[%s442_s16 + $0x8] sm:$0xff] %vm226_vm5, %v269_v33 }
 0x11d   : > { %v230_v34 = vpop.permute.xlu1 %229  ;;  %v239_v36 = vpop.permute.xlu0 %238 }
 0x11e   : > { %v234_v35 = vsel %vm233_vm7, %v230_v34, %v232_v31 }
 0x11f   : > { %237 = vst.msk [vmem:[%s442_s16] sm:$0xff] %vm236_vm8, %v234_v35 }
 0x120   : > { %242 = vst.msk [vmem:[%s442_s16] sm:$0xff] %vm241_vm9, %v239_v36 }
 0x121   : > { %v273_v37 = vpop.permute.xlu1 %272 }
 0x122   : > { %275 = vst.msk [vmem:[%s442_s16 + $0x8] sm:$0xff] %vm236_vm8, %v273_v37 }
 0x125   : > { %v277_v38 = vpop.permute.xlu1 %276 }
 0x126   : > { %279 = vst.msk [vmem:[%s442_s16 + $0x8] sm:$0xff] %vm241_vm9, %v277_v38 }
 0x127 PF: > { %s13_s12 = sadd.s32 1, %s379_s12  }
 0x128   : > { %p10_p4 = scmp.ge.s32.totalorder %s13_s12, 4  }
 0x12a   :  { %12 = sbr.rel (!%p10_p4) target bundleno = 1 (0x1), region = 62 }

// kernel: _double_conv_impl.3
= control target key start
LH: loop header
LB: loop body
LE: loop exit
PB: predicated region body
PF: predicated region fallthrough
CT: control target
= control target key end

     0   :  { %s953_s18 = smov 0   ;;  %s1058_s0 = inlined_call_operand.vmem [shape: bf16[2,4,384], index: 0, kind: input, shape index: {}]   ;;  %s1059_s1 = inlined_call_operand.vmem [shape: bf16[8,36], index: 1, kind: input, shape index: {}]   ;;  %s1060_s2 = inlined_call_operand.vmem [shape: f32[8,1], index: 2, kind: input, shape index: {}]   ;;  %s1061_s3 = inlined_call_operand.vmem [shape: f32[1,384], index: 3, kind: input, shape index: {}]   ;;  %s1062_s4 = inlined_call_operand.vmem [shape: bf16[2,8,384], index: 4, kind: output, shape index: {0}]   ;;  %s1063_s5 = inlined_call_operand.vmem [shape: f32[2,8,2], index: 5, kind: output, shape index: {1}]  }
   0x1 LB: > { %s818_s19 = sadd.s32 4294967295, %s908_s18   ;;  %p822_p0 = scmp.ge.s32.totalorder %s908_s18, 1  ;;  %s908_s18 = sphi %s953_s18, %s16_s18  }
   0x2   : > { %p190_p1 = scmp.lt.s32.totalorder %s908_s18, 3 }
   0x4   : > { %p191_p2 = pnand %p822_p0, %p190_p1 }
   0x5   : > { %p222_p3 = scmp.lt.s32.totalorder (!%p191_p2), %s818_s19, 1  ;;  %v250_v0 = vlaneseq (!%p191_p2)  ;;  %v910_v1 = vmov (!%p191_p2), 1983009808   ;;  %s911_s24 = smov (!%p191_p2), 126   ;;  %vm257_vm0 = vcmask (!%p191_p2), 254976   ;;  %v915_v24 = vmov (!%p191_p2), 0.0  }
   0x6   : > { %194 = sbr.rel (%p191_p2) target bundleno = 556 (0x22c), region = 36  ;;  %v248_v2 = vunpack.c.l.s4 (!%p191_p2), %v910_v1  ;;  %s912_s25 = smov (!%p191_p2), 127   ;;  %849 = vmatprep.subr.bf16.mxu1 (!%p191_p2), %v915_v24  ;;  %vm920_vm1 = vmmov (!%p191_p2), 0   ;;  %v921_v42 = vmov (!%p191_p2), 0   ;;  %v512_v43 = vld [vmem:[%s1060_s2] sm:$0xff] (!%p191_p2)  ;;  %vm289_vm2 = vcmask (!%p191_p2), 257026  }
   0x7   : > { %v963_v3 = vshrl.u32 (!%p191_p2), %v250_v0, 7  ;;  %s913_s26 = smov (!%p191_p2), 110   ;;  %s914_s27 = smov (!%p191_p2), 109   ;;  %855 = vmatprep.mubr.msk.bf16.mxu1 (!%p191_p2), %vm920_vm1, %v915_v24  ;;  %604 = vmatprep.mubr.bf16.mxu0 (!%p191_p2), %v921_v42  ;;  %v653_v44 = vld [vmem:[%s1061_s3] sm:$0x7] (!%p191_p2)  ;;  %vm282_vm3 = vcmask (!%p191_p2), 1043456  }
   0x8   : > { %v249_v4 = vunpack.c.0.s8 (!%p191_p2), %v248_v2  ;;  %s916_s28 = smov (!%p191_p2), 108   ;;  %s917_s29 = smov (!%p191_p2), 92   ;;  %882 = vset.pattern.permute.xlu0 (!%p191_p2), %v921_v42  ;;  %vm315_vm4 = vcmask (!%p191_p2), 1031168   ;;  %vm284_vm5 = vcmask (!%p191_p2), 1039360   ;;  %vm375_vm6 = vcmask (!%p191_p2), 891904  }
   0x9   : > { %s918_s30 = smov (!%p191_p2), 91   ;;  %s919_s6 = smov (!%p191_p2), 90   ;;  %v657_v45 = vsub.s32 (!%p191_p2), 0, %v963_v3  ;;  %v661_v46 = vsub.s32 (!%p191_p2), 1, %v963_v3  ;;  %v665_v47 = vsub.s32 (!%p191_p2), 2, %v963_v3  ;;  %vm345_vm7 = vcmask (!%p191_p2), 900096  }
   0xa   : > { %v967_v5 = vsub.s32 (!%p191_p2), %v249_v4, %v963_v3  ;;  %vm405_vm8 = vcmask (!%p191_p2), 883712   ;;  %vm435_vm9 = vcmask (!%p191_p2), 752640   ;;  %vm465_vm10 = vcmask (!%p191_p2), 744448   ;;  %s922_s17 = smov (!%p191_p2), 19  }
   0xb   : > { %v658_v48 = vrot.slane (!%p191_p2), %v653_v44, %v657_v45  ;;  %v666_v49 = vrot.slane (!%p191_p2), %v653_v44, %v665_v47  ;;  %v662_v50 = vrot.slane (!%p191_p2), %v653_v44, %v661_v46  ;;  %vm495_vm11 = vcmask (!%p191_p2), 736256   ;;  %v501_v47 = vld [vmem:[%s1059_s1] sm:$0xf] (!%p191_p2) }
   0xc   : > { %vm562_vm12 = vcmask (!%p191_p2), 1041408   ;;  %vm558_vm13 = vcmask (!%p191_p2), 293888   ;;  %vm683_vm14 = vcmask (!%p191_p2), 261120   ;;  %vm688_vm15 = vcmask (!%p191_p2), 7168  }
   0xd   : > { %s1065_s19 = smov (!%p222_p3, %s818_s19), 1  ;;  %vm726_vm1 = vcmask 1043608  }
   0xe   : > { %s859_s20 = smul.u32 6, %s1065_s19 }
   0xf   : > { %s860_s7 = smul.u32 12, %s1065_s19 }
  0x10   : > { %s972_s23 = scalar_lea.vmem %s1058_s0, %s859_s20  ;;  %s825_s20 = sshll.u32 %s1065_s19, 3 }
  0x11   : > { %v291_v6 = vld [vmem:[%s972_s23] sm:$0x3f]  ;;  %s1009_s10 = scalar_lea.vmem %s1062_s4, %s860_s7 }
  0x12   : > { %v259_v7 = vld [vmem:[%s972_s23] sm:$0x3f]  ;;  %v300_v9 = vrot.slane %v291_v6, %v967_v5  ;;  %v293_v12 = vcombine.high %v291_v6, %v291_v6  ;;  %703 = vst [vmem:[%s1009_s10] sm:$0xff] %v921_v42  ;;  %704 = vst [vmem:[%s1009_s10 + $0x8] sm:$0xf] %v921_v42 }
  0x13   : > { %v321_v8 = vld [vmem:[%s972_s23] sm:$0x3f]  ;;  %v275_v10 = vrot.slane %v259_v7, %v967_v5  ;;  %v261_v14 = vcombine.low %v259_v7, %v259_v7 }
  0x14   : > { %v351_v11 = vld [vmem:[%s972_s23] sm:$0x3f]  ;;  %308 = vrot.lane.b32.xlu1 %v300_v9, %s911_s24  ;;  %v337_v15 = vrot.slane %v321_v8, %v967_v5  ;;  %v307_v19 = vrot.slane %v293_v12, %v967_v5  ;;  %v323_v21 = vcombine.low %v321_v8, %v321_v8 }
  0x15   : > { %v237_v13 = vld [vmem:[%s972_s23] sm:$0x3f]  ;;  %278 = vrot.lane.b32.xlu0 %v275_v10, %s912_s25  ;;  %v360_v16 = vrot.slane %v351_v11, %v967_v5  ;;  %v353_v17 = vcombine.high %v351_v11, %v351_v11  ;;  %v268_v20 = vrot.slane %v261_v14, %v967_v5 }
  0x16   : > { %826 = vst.sshfl [vmem:[#allocation2] sm:$0xf pattern:$0x76325410] %v237_v13  ;;  %v239_v18 = vcombine.high %v237_v13, %v237_v13  ;;  %v381_v22 = vld [vmem:[%s972_s23] sm:$0x3f]  ;;  %v330_v26 = vrot.slane %v323_v21, %v967_v5 }
  0x17   : > { %v367_v25 = vrot.slane %v353_v17, %v967_v5  ;;  %v383_v27 = vcombine.low %v381_v22, %v381_v22  ;;  %v411_v28 = vld [vmem:[%s972_s23] sm:$0x3f]  ;;  %v397_v29 = vrot.slane %v381_v22, %v967_v5 }
  0x18   : > { %340 = vrot.lane.b32.xlu1 %v337_v15, %s913_s26  ;;  %v253_v23 = vrot.slane %v239_v18, %v967_v5  ;;  %v413_v31 = vcombine.high %v411_v28, %v411_v28  ;;  %v441_v32 = vld [vmem:[%s972_s23] sm:$0x3f]  ;;  %v420_v34 = vrot.slane %v411_v28, %v967_v5 }
  0x19   : > { %368 = vrot.lane.b32.xlu0 %v360_v16, %s914_s27  ;;  %v390_v30 = vrot.slane %v383_v27, %v967_v5  ;;  %v443_v35 = vcombine.low %v441_v32, %v441_v32  ;;  %v471_v36 = vld [vmem:[%s972_s23] sm:$0x3f]  ;;  %v457_v37 = vrot.slane %v441_v32, %v967_v5  ;;  %s235_s23 = scalar_lea.vmem %s1063_s5, %s825_s20 }
  0x1a   : > { %258 = vst.msk [vmem:[#allocation2 + $0x8] sm:$0x3] %vm257_vm0, %v253_v23  ;;  %v427_v33 = vrot.slane %v413_v31, %v967_v5  ;;  %v473_v39 = vcombine.high %v471_v36, %v471_v36  ;;  %v480_v41 = vrot.slane %v471_v36, %v967_v5 }
  0x1b   : > { %v450_v38 = vrot.slane %v443_v35, %v967_v5 }
  0x1c   : > { %310 = vrot.lane.b32.xlu1 %v307_v19, %s911_s24  ;;  %v487_v40 = vrot.slane %v473_v39, %v967_v5 }
  0x1d   : > { %276 = vrot.lane.b32.xlu0 %v268_v20, %s912_s25 }
  0x20   : > { %370 = vrot.lane.b32.xlu1 %v367_v25, %s914_s27 }
  0x21   : > { %338 = vrot.lane.b32.xlu0 %v330_v26, %s913_s26 }
  0x24   : > { %400 = vrot.lane.b32.xlu1 %v397_v29, %s916_s28 }
  0x25   : > { %398 = vrot.lane.b32.xlu0 %v390_v30, %s916_s28 }
  0x28   : > { %430 = vrot.lane.b32.xlu1 %v427_v33, %s917_s29 }
  0x29   : > { %428 = vrot.lane.b32.xlu0 %v420_v34, %s917_s29 }
  0x2c   : > { %460 = vrot.lane.b32.xlu1 %v457_v37, %s918_s30 }
  0x2d   : > { %458 = vrot.lane.b32.xlu0 %v450_v38, %s918_s30 }
  0x30   : > { %490 = vrot.lane.b32.xlu1 %v487_v40, %s919_s6 }
  0x31   : > { %488 = vrot.lane.b32.xlu0 %v480_v41, %s919_s6 }
  0x34   : > { %667 = vrot.lane.b32.xlu1 %v658_v48, %s914_s27 }
  0x35   : > { %515 = vperm.xlu0 %882, %v512_v43  }
  0x38   : > { %669 = vrot.lane.b32.xlu1 %v662_v50, %s914_s27 }
  0x39   : > { %671 = vrot.lane.b32.xlu0 %v666_v49, %s914_s27 }
  0x86   : > { %v309_v51 = vpop.permute.xlu1 %308 }
  0x87   : > { %v279_v52 = vpop.permute.xlu0 %278  ;;  %v312_v57 = vrot.slane %v309_v51, 4 }
  0x88   : > { %290 = vst.msk [vmem:[#allocation2 + $0x8] sm:$0xc] %vm289_vm2, %v279_v52  ;;  %v281_v58 = vrot.slane %v279_v52, 4 }
  0x8a   : > { %v341_v53 = vpop.permute.xlu1 %340 }
  0x8b   : > { %v369_v54 = vpop.permute.xlu0 %368  ;;  %350 = vst.msk [vmem:[#allocation2 + $0x14] sm:$0xc] %vm289_vm2, %v341_v53  ;;  %v343_v3 = vrot.slane %v341_v53, 4 }
  0x8c   : > { %v372_v4 = vrot.slane %v369_v54, 4 }
  0x8e   : > { %v311_v55 = vpop.permute.xlu1 %310 }
  0x8f   : > { %v277_v56 = vpop.permute.xlu0 %276  ;;  %v313_v59 = vrot.slane %v311_v55, 4  ;;  %320 = vst.msk [vmem:[#allocation2 + $0x14] sm:$0x3] %vm257_vm0, %v311_v55 }
  0x90   : > { %v280_v60 = vrot.slane %v277_v56, 4 }
  0x91   : > { %v314_v61 = vsel %vm282_vm3, %v312_v57, %v313_v59 }
  0x92   : > { %v283_v62 = vsel %vm282_vm3, %v280_v60, %v281_v58  ;;  %v316_v63 = vsel %vm315_vm4, %v309_v51, %v314_v61  ;;  %v371_v1 = vpop.permute.xlu1 %370 }
  0x93   : > { %v285_v0 = vsel %vm284_vm5, %v277_v56, %v283_v62  ;;  %v339_v2 = vpop.permute.xlu0 %338  ;;  %319 = vst [vmem:[#allocation2 + $0xc] sm:$0x33] %v316_v63  ;;  %v373_v5 = vrot.slane %v371_v1, 4  ;;  %380 = vst.msk [vmem:[#allocation2 + $0x20] sm:$0x3] %vm257_vm0, %v371_v1  ;;  %vm730_vm5 = vcmask 412672  }
  0x94   : > { %288 = vst [vmem:[#allocation2] sm:$0xcc] %v285_v0  ;;  %v342_v6 = vrot.slane %v339_v2, 4 }
  0x95   : > { %v374_v7 = vsel %vm282_vm3, %v372_v4, %v373_v5 }
  0x96   : > { %v344_v8 = vsel %vm282_vm3, %v342_v6, %v343_v3  ;;  %v376_v9 = vsel %vm375_vm6, %v369_v54, %v374_v7  ;;  %v401_v11 = vpop.permute.xlu1 %400  ;;  %v892_v13 = vld [vmem:[#allocation2 + $0x8] ss:$12 sps:$4 sm:$0xff]  }
  0x97   : > { %v346_v10 = vsel %vm345_vm7, %v339_v2, %v344_v8  ;;  %v399_v12 = vpop.permute.xlu0 %398  ;;  %379 = vst [vmem:[#allocation2 + $0x18] sm:$0x33] %v376_v9  ;;  %v403_v14 = vrot.slane %v401_v11, 4  ;;  %410 = vst.msk [vmem:[#allocation2 + $0x20] sm:$0xc] %vm289_vm2, %v401_v11  ;;  %850 = vmatpush3.bf16.msra.mxu1 %v892_v13 }
  0x98   : > { %349 = vst [vmem:[#allocation2 + $0xc] sm:$0xcc] %v346_v10  ;;  %v402_v15 = vrot.slane %v399_v12, 4  ;;  %851 = vmatprep.subr.bf16.mxu1 %v915_v24 }
  0x9a   : > { %v404_v16 = vsel %vm282_vm3, %v402_v15, %v403_v14  ;;  %v431_v18 = vpop.permute.xlu1 %430 }
  0x9b   : > { %v406_v17 = vsel %vm405_vm8, %v399_v12, %v404_v16  ;;  %v429_v19 = vpop.permute.xlu0 %428  ;;  %v433_v20 = vrot.slane %v431_v18, 4  ;;  %440 = vst.msk [vmem:[#allocation2 + $0x2c] sm:$0x3] %vm257_vm0, %v431_v18  ;;  %v502_v23 = vld [vmem:[#allocation2] sm:$0xff] }
  0x9c   : > { %409 = vst [vmem:[#allocation2 + $0x18] sm:$0xcc] %v406_v17  ;;  %v432_v21 = vrot.slane %v429_v19, 4 }
  0x9e   : > { %v434_v22 = vsel %vm282_vm3, %v432_v21, %v433_v20  ;;  %v461_v26 = vpop.permute.xlu1 %460 }
  0x9f   : > { %v436_v25 = vsel %vm435_vm9, %v429_v19, %v434_v22  ;;  %v459_v27 = vpop.permute.xlu0 %458  ;;  %v504_v28 = vld [vmem:[#allocation2 + $0xc] sm:$0xff]  ;;  %v463_v30 = vrot.slane %v461_v26, 4  ;;  %470 = vst.msk [vmem:[#allocation2 + $0x2c] sm:$0xc] %vm289_vm2, %v461_v26  ;;  %vm727_vm2 = vcmask 1047556  }
  0xa0   : > { %v893_v29 = vld [vmem:[#allocation2 + $0x4] ss:$12 sps:$4 sm:$0xff]   ;;  %439 = vst [vmem:[#allocation2 + $0x24] sm:$0x33] %v436_v25  ;;  %v462_v31 = vrot.slane %v459_v27, 4  ;;  %v827_v32 = vcombine.low %v502_v23, %v504_v28  ;;  %vm728_vm4 = vmor %vm727_vm2, %vm726_vm1 }
  0xa1   : > { %572 = vmatprep.subr.bf16.mxu0 %v893_v29 }
  0xa2   : > { %v464_v33 = vsel %vm282_vm3, %v462_v31, %v463_v30  ;;  %573 = vmatpush1.bf16.msra.mxu0 %v827_v32  ;;  %v491_v35 = vpop.permute.xlu1 %490 }
  0xa3   : > { %v466_v34 = vsel %vm465_vm10, %v459_v27, %v464_v33  ;;  %v489_v36 = vpop.permute.xlu0 %488  ;;  %v493_v37 = vrot.slane %v491_v35, 4  ;;  %500 = vst.msk [vmem:[#allocation2 + $0x38] sm:$0x3] %vm257_vm0, %v491_v35  ;;  %vm701_vm0 = vcmask 15368  }
  0xa4   : > { %469 = vst [vmem:[#allocation2 + $0x24] sm:$0xcc] %v466_v34  ;;  %v492_v38 = vrot.slane %v489_v36, 4 }
  0xa6   : > { %v494_v39 = vsel %vm282_vm3, %v492_v38, %v493_v37  ;;  %v895_v41 = vld [vmem:[#allocation2 + $0x20] ss:$12 sps:$4 sm:$0xff]   ;;  %vm721_vm3 = vcmask 154624  }
  0xa7   : > { %v496_v40 = vsel %vm495_vm11, %v489_v36, %v494_v39  ;;  %852 = vmatpush3.bf16.msra.mxu1 %v895_v41 }
  0xa8   : > { %499 = vst [vmem:[#allocation2 + $0x30] sm:$0x33] %v496_v40  ;;  %853 = vmatprep.subr.bf16.mxu1 %v915_v24  ;;  %v668_v24 = vpop.permute.xlu1 %667 }
  0xaa   : > { %v899_v44 = vld [vmem:[#allocation2 + $0x38] ss:$0 sps:$4 sm:$0x33]  }
  0xab   : > { %v896_v42 = vld [vmem:[#allocation2 + $0x1c] ss:$12 sps:$4 sm:$0xff]   ;;  %v898_v43 = vld [vmem:[#allocation2 + $0x18] ss:$12 sps:$4 sm:$0xff]   ;;  %v570_v45 = vsel %vm562_vm12, %v899_v44, 0 }
  0xac   : > { %574 = vmatprep.subr.bf16.mxu0 %v896_v42  ;;  %854 = vmatpush3.bf16.msra.mxu1 %v570_v45  ;;  %v670_v54 = vpop.permute.xlu1 %669 }
  0xad   : > { %575 = vmatpush1.bf16.msra.mxu0 %v898_v43  ;;  %v674_v59 = vsel %vm375_vm6, %v668_v24, %v670_v54 }
  0xaf   : > { %v510_v46 = vld [vmem:[#allocation2 + $0x30] sm:$0x33]  ;;  %856 = vmatmul.mubr.msk.bf16.vlgmr.msra.gmra.mrb[0].mxu1 %vm558_vm13, %v501_v47 }
  0xb0   : > { %v834_v48 = vcombine.high %v510_v46, %v510_v46  ;;  %v833_v49 = vcombine.low %v510_v46, %v510_v46 }
  0xb2   : > { %836 = vmatprep.subr.msk.bf16.mxu0 %vm562_vm12, %v834_v48  ;;  %v564_v50 = vsel %vm562_vm12, %v833_v49, 0 }
  0xb3   : > { %577 = vmatpush1.bf16.msra.mxu0 %v564_v50 }
  0xb4   : > { %v516_v51 = vpop.permute.xlu0 %515 }
  0xb6   : > { %837 = vmatmul.mubr.msk.bf16.vlgmr.msra.gmra.mrb[0].mxu0 %vm558_vm13, %v501_v47 }
  0xb8   : > { %v672_v57 = vpop.permute.xlu0 %671 }
  0xb9   : > { %v675_v0 = vsel %vm375_vm6, %v670_v54, %v672_v57 }
 0x182   : > { %v647_v52 = vpop.f32.mrb[0].mxu1 }
 0x183   : > { %v648_v53 = vadd.f32 %v647_v52, %v516_v51  ;;  %v857_v55 = vpop.f32.mrb[1].mxu1 }
 0x184   : > { %v650_v56 = vpop.f32.mrb[2].mxu1 }
 0x185   : > { %v858_v58 = vpop.f32.mrb[3].mxu1  ;;  %v692_v61 = vmul.f32 %v648_v53, %v648_v53  ;;  %v681_v5 = vmul.f32 %v672_v57, %v648_v53  ;;  %v844_v19 = vpack.c.bf16 %v648_v53, %v648_v53 }
 0x187   : > { %v695_v10 = vmul.f32 %v692_v61, %v672_v57  ;;  %v684_v14 = vsel %vm683_vm14, %v681_v5, 0.0 }
 0x189   : > { %v606_v60 = vpop.f32.mrb[0].mxu0  ;;  %v697_v17 = vsel %vm683_vm14, %v695_v10, 0.0 }
 0x18a   : > { %v607_v62 = vadd.f32 %v606_v60, %v516_v51  ;;  %v608_v63 = vpop.f32.mrb[1].mxu0 }
 0x18b   : > { %v609_v1 = vadd.f32 %v608_v63, %v516_v51  ;;  %v610_v2 = vpop.f32.mrb[2].mxu0 }
 0x18c   : > { %v679_v3 = vmul.f32 %v674_v59, %v607_v62  ;;  %v690_v4 = vmul.f32 %v607_v62, %v607_v62  ;;  %v611_v6 = vpop.f32.mrb[3].mxu0 }
 0x18d   : > { %v691_v7 = vmul.f32 %v609_v1, %v609_v1  ;;  %v680_v8 = vmul.f32 %v675_v0, %v609_v1  ;;  %v843_v9 = vpack.c.bf16 %v609_v1, %v607_v62 }
 0x18e   : > { %v693_v11 = vmul.f32 %v690_v4, %v674_v59 }
 0x18f   : > { %v694_v12 = vmul.f32 %v691_v7, %v675_v0  ;;  %v682_v13 = vadd.f32 %v680_v8, %v679_v3 }
 0x191   : > { %v685_v15 = vadd.f32 %v684_v14, %v682_v13  ;;  %v696_v16 = vadd.f32 %v694_v12, %v693_v11 }
 0x193   : > { %686 = vadd.xlane.f32.xlu1 %v685_v15  ;;  %v698_v18 = vadd.f32 %v697_v17, %v696_v16 }
 0x195   : > { %699 = vadd.xlane.f32.xlu0 %v698_v18 }
 0x1a4   : > { %718 = vrot.lane.b32.xlu1 %v844_v19, %s922_s17 }
 0x1ab   : > { %716 = vrot.lane.b32.xlu0 %v843_v9, %s922_s17 }
 0x220   : > { %v687_v20 = vpop.xlane.xlu1 %686 }
 0x221   : > { %689 = vst.msk [vmem:[%s235_s23] sm:$0xff] %vm688_vm15, %v687_v20 }
 0x222   : > { %v700_v21 = vpop.xlane.xlu0 %699 }
 0x223   : > { %702 = vst.msk [vmem:[%s235_s23] sm:$0xff] %vm701_vm0, %v700_v21 }
 0x224   : > { %v719_v25 = vpop.permute.xlu1 %718 }
 0x226   : > { %v717_v22 = vpop.permute.xlu0 %716 }
 0x227   : > { %v720_v23 = vrot.slane %v717_v22, 4 }
 0x229   : > { %v722_v26 = vsel %vm721_vm3, %v720_v23, %v717_v22  ;;  %v723_v27 = vsel %vm721_vm3, %v720_v23, %v719_v25 }
 0x22a   : > { %729 = vst.msk [vmem:[%s1009_s10] sm:$0xff] %vm728_vm4, %v722_v26 }
 0x22b   : > { %731 = vst.msk [vmem:[%s1009_s10 + $0x8] sm:$0xf] %vm730_vm5, %v723_v27 }
 0x22c PF: > { %s16_s18 = sadd.s32 1, %s908_s18  }
 0x22d   : > { %p13_p4 = scmp.ge.s32.totalorder %s16_s18, 4  }
 0x22f   :  { %15 = sbr.rel (!%p13_p4) target bundleno = 1 (0x1), region = 78 }

// kernel: _double_conv_impl.4
= control target key start
LH: loop header
LB: loop body
LE: loop exit
PB: predicated region body
PF: predicated region fallthrough
CT: control target
= control target key end

     0   :  { %s994_s24 = smov 0   ;;  %s1105_s0 = inlined_call_operand.vmem [shape: bf16[2,8,384], index: 0, kind: input, shape index: {}]   ;;  %s1106_s1 = inlined_call_operand.vmem [shape: f32[8,1], index: 1, kind: input, shape index: {}]   ;;  %s1107_s2 = inlined_call_operand.vmem [shape: f32[8,1], index: 2, kind: input, shape index: {}]   ;;  %s1108_s3 = inlined_call_operand.vmem [shape: bf16[8,72], index: 3, kind: input, shape index: {}]   ;;  %s1109_s4 = inlined_call_operand.vmem [shape: f32[8,1], index: 4, kind: input, shape index: {}]   ;;  %s1110_s5 = inlined_call_operand.vmem [shape: f32[1,384], index: 5, kind: input, shape index: {}]   ;;  %s1111_s6 = inlined_call_operand.vmem [shape: bf16[2,8,384], index: 6, kind: output, shape index: {0}]   ;;  %s1112_s7 = inlined_call_operand.vmem [shape: f32[2,8,2], index: 7, kind: output, shape index: {1}]  }
   0x1 LB: > { %s851_s25 = sadd.s32 4294967295, %s940_s24   ;;  %p855_p0 = scmp.ge.s32.totalorder %s940_s24, 1  ;;  %s940_s24 = sphi %s994_s24, %s18_s24  }
   0x2   : > { %p240_p1 = scmp.lt.s32.totalorder %s940_s24, 3 }
   0x4   : > { %p241_p2 = pnand %p855_p0, %p240_p1 }
   0x5   : > { %p276_p3 = scmp.lt.s32.totalorder (!%p241_p2), %s851_s25, 1  ;;  %v293_v0 = vld [vmem:[%s1106_s1] sm:$0xff] (!%p241_p2)  ;;  %v942_v1 = vmov (!%p241_p2), 0   ;;  %v319_v3 = vlaneseq (!%p241_p2)  ;;  %s943_s16 = smov (!%p241_p2), 126   ;;  %v946_v33 = vmov (!%p241_p2), 0.0   ;;  %vm355_vm0 = vcmask (!%p241_p2), 257024  }
   0x6   : > { %244 = sbr.rel (%p241_p2) target bundleno = 680 (0x2a8), region = 44  ;;  %928 = vset.pattern.permute.xlu0 (!%p241_p2), %v942_v1  ;;  %637 = vmatprep.mubr.bf16.mxu0 (!%p241_p2), %v942_v1  ;;  %v305_v2 = vld [vmem:[%s1107_s2] sm:$0xff] (!%p241_p2)  ;;  %s944_s17 = smov (!%p241_p2), 127   ;;  %vm952_vm1 = vmmov (!%p241_p2), 0   ;;  %vm367_vm2 = vcmask (!%p241_p2), 1043456   ;;  %vm369_vm3 = vcmask (!%p241_p2), 1039360  }
   0x7   : > { %299 = vperm.xlu0 (!%p241_p2), %928, %v293_v0   ;;  %v1021_v6 = vshrl.u32 (!%p241_p2), %v319_v3, 7  ;;  %v317_v13 = vld [vmem:[%s1110_s5] sm:$0x7] (!%p241_p2)  ;;  %s945_s18 = smov (!%p241_p2), 110   ;;  %893 = vmatprep.subr.bf16.mxu1 (!%p241_p2), %v946_v33  ;;  %s947_s19 = smov (!%p241_p2), 109   ;;  %vm386_vm4 = vcmask (!%p241_p2), 1031168  }
   0x8   : > { %s948_s20 = smov (!%p241_p2), 108   ;;  %s949_s21 = smov (!%p241_p2), 92   ;;  %v513_v40 = vld [vmem:[%s1109_s4] sm:$0xff] (!%p241_p2)  ;;  %903 = vmatprep.mubr.msk.bf16.mxu1 (!%p241_p2), %vm952_vm1, %v946_v33  ;;  %vm403_vm5 = vcmask (!%p241_p2), 900096   ;;  %vm420_vm6 = vcmask (!%p241_p2), 891904   ;;  %vm437_vm7 = vcmask (!%p241_p2), 883712  }
   0x9   : > { %v321_v11 = vsub.s32 (!%p241_p2), 0, %v1021_v6  ;;  %v325_v12 = vsub.s32 (!%p241_p2), 1, %v1021_v6  ;;  %v329_v14 = vsub.s32 (!%p241_p2), 2, %v1021_v6  ;;  %s950_s22 = smov (!%p241_p2), 91   ;;  %s951_s23 = smov (!%p241_p2), 90   ;;  %vm454_vm8 = vcmask (!%p241_p2), 752640  }
   0xa   : > { %v686_v44 = vld [vmem:[%s1110_s5] sm:$0x7] (!%p241_p2)  ;;  %vm471_vm9 = vcmask (!%p241_p2), 744448   ;;  %vm488_vm10 = vcmask (!%p241_p2), 736256   ;;  %vm591_vm11 = vcmask (!%p241_p2), 588800   ;;  %vm716_vm12 = vcmask (!%p241_p2), 261120  }
   0xb   : > { %308 = vperm.xlu0 (!%p241_p2), %928, %v305_v2   ;;  %v322_v18 = vrot.slane (!%p241_p2), %v317_v13, %v321_v11  ;;  %v326_v19 = vrot.slane (!%p241_p2), %v317_v13, %v325_v12  ;;  %v330_v21 = vrot.slane (!%p241_p2), %v317_v13, %v329_v14  ;;  %v691_v45 = vrot.slane (!%p241_p2), %v686_v44, %v321_v11  ;;  %s953_s9 = smov (!%p241_p2), 19  }
   0xc   : > { %v695_v46 = vrot.slane (!%p241_p2), %v686_v44, %v325_v12  ;;  %v699_v47 = vrot.slane (!%p241_p2), %v686_v44, %v329_v14  ;;  %vm721_vm13 = vcmask (!%p241_p2), 7168   ;;  %vm734_vm14 = vcmask (!%p241_p2), 15368  }
   0xd   : > { %s1114_s25 = smov (!%p276_p3, %s851_s25), 1  ;;  %vm759_vm15 = vcmask 1043608   ;;  %vm754_vm1 = vcmask 154624  }
   0xe   : > { %s907_s30 = smul.u32 12, %s1114_s25  ;;  %s858_s11 = sshll.u32 %s1114_s25, 3 }
   0xf   : > { %s289_s14 = scalar_lea.vmem %s1112_s7, %s858_s11 }
  0x10   : > { %s1014_s10 = scalar_lea.vmem %s1111_s6, %s907_s30  ;;  %s280_s13 = scalar_lea.vmem %s1105_s0, %s907_s30 }
  0x11   : > { %736 = vst [vmem:[%s1014_s10] sm:$0xff] %v942_v1  ;;  %737 = vst [vmem:[%s1014_s10 + $0x8] sm:$0xf] %v942_v1  ;;  %v291_v4 = vld [vmem:[%s280_s13] sm:$0xff]  ;;  %v292_v5 = vld [vmem:[%s280_s13 + $0x8] sm:$0xf] }
  0x12   : > { %v294_v7 = vunpack.c.l.bf16 %v291_v4  ;;  %v295_v8 = vunpack.c.h.bf16 %v291_v4  ;;  %v296_v9 = vunpack.c.l.bf16 %v292_v5 }
  0x86   : > { %v300_v10 = vpop.permute.xlu0 %299 }
  0x87   : > { %v302_v15 = vmul.f32 %v300_v10, %v294_v7  ;;  %v303_v16 = vmul.f32 %v300_v10, %v295_v8  ;;  %v304_v17 = vmul.f32 %v300_v10, %v296_v9 }
  0x8a   : > { %v309_v20 = vpop.permute.xlu0 %308 }
  0x8b   : > { %v311_v22 = vadd.f32 %v309_v20, %v302_v15  ;;  %v312_v23 = vadd.f32 %v309_v20, %v303_v16  ;;  %v313_v24 = vadd.f32 %v309_v20, %v304_v17 }
  0x8d   : > { %v314_v25 = vmax.f32 %v311_v22, 0.0  ;;  %v315_v26 = vmax.f32 %v312_v23, 0.0  ;;  %v316_v27 = vmax.f32 %v313_v24, 0.0 }
  0x8f   : > { %v334_v28 = vmul.f32 %v322_v18, %v314_v25  ;;  %v335_v29 = vmul.f32 %v326_v19, %v315_v26  ;;  %v336_v30 = vmul.f32 %v330_v21, %v316_v27 }
  0x91   : > { %v1035_v31 = vpack.c.bf16 %v335_v29, %v334_v28  ;;  %v884_v32 = vpack.c.bf16 %v336_v30, %v336_v30 }
  0x93   : > { %351 = vst [vmem:[#allocation2 + $0x8] sm:$0xf] %v884_v32  ;;  %379 = vrot.lane.b32.xlu0 %v1035_v31, %s943_s16  ;;  %361 = vrot.lane.b32.xlu1 %v1035_v31, %s944_s17 }
  0x97   : > { %396 = vrot.lane.b32.xlu0 %v1035_v31, %s945_s18 }
  0x9a   : > { %v358_v34 = vld [vmem:[#allocation2 + $0x8] sm:$0xf] }
  0x9b   : > { %363 = vrot.lane.b32.xlu1 %v358_v34, %s944_s17  ;;  %413 = vrot.lane.b32.xlu0 %v1035_v31, %s947_s19  ;;  %v353_v35 = vld [vmem:[#allocation2 + $0x8] sm:$0xf] }
  0x9c   : > { %356 = vst.msk [vmem:[#allocation3 + $0x8] sm:$0xf] %vm355_vm0, %v353_v35  ;;  %v376_v36 = vld [vmem:[#allocation2 + $0x8] sm:$0xf] }
  0x9d   : > { %v393_v37 = vld [vmem:[#allocation2 + $0x8] sm:$0xf] }
  0x9e   : > { %v410_v38 = vld [vmem:[#allocation2 + $0x8] sm:$0xf] }
  0x9f   : > { %381 = vrot.lane.b32.xlu1 %v376_v36, %s943_s16  ;;  %430 = vrot.lane.b32.xlu0 %v1035_v31, %s948_s20  ;;  %v427_v39 = vld [vmem:[#allocation2 + $0x8] sm:$0xf] }
  0xa0   : > { %v444_v41 = vld [vmem:[#allocation2 + $0x8] sm:$0xf] }
  0xa1   : > { %v461_v42 = vld [vmem:[#allocation2 + $0x8] sm:$0xf] }
  0xa2   : > { %v478_v43 = vld [vmem:[#allocation2 + $0x8] sm:$0xf] }
  0xa3   : > { %398 = vrot.lane.b32.xlu1 %v393_v37, %s945_s18  ;;  %447 = vrot.lane.b32.xlu0 %v1035_v31, %s949_s21 }
  0xa7   : > { %415 = vrot.lane.b32.xlu1 %v410_v38, %s947_s19  ;;  %464 = vrot.lane.b32.xlu0 %v1035_v31, %s950_s22 }
  0xab   : > { %432 = vrot.lane.b32.xlu1 %v427_v39, %s948_s20  ;;  %481 = vrot.lane.b32.xlu0 %v1035_v31, %s951_s23 }
  0xaf   : > { %449 = vrot.lane.b32.xlu1 %v444_v41, %s949_s21  ;;  %516 = vperm.xlu0 %928, %v513_v40  }
  0xb3   : > { %466 = vrot.lane.b32.xlu1 %v461_v42, %s950_s22  ;;  %702 = vrot.lane.b32.xlu0 %v695_v46, %s947_s19 }
  0xb7   : > { %483 = vrot.lane.b32.xlu1 %v478_v43, %s951_s23 }
  0xbb   : > { %700 = vrot.lane.b32.xlu1 %v691_v45, %s947_s19 }
  0xbf   : > { %704 = vrot.lane.b32.xlu1 %v699_v47, %s947_s19  ;;  %v494_v47 = vld [vmem:[%s1108_s3] sm:$0xf] }
 0x105   : > { %v380_v48 = vpop.permute.xlu0 %379  ;;  %v362_v49 = vpop.permute.xlu1 %361 }
 0x106   : > { %v365_v52 = vrot.slane %v362_v49, 4  ;;  %v383_v58 = vrot.slane %v380_v48, 4 }
 0x109   : > { %v397_v50 = vpop.permute.xlu0 %396 }
 0x10a   : > { %v400_v3 = vrot.slane %v397_v50, 4 }
 0x10d   : > { %v364_v51 = vpop.permute.xlu1 %363  ;;  %v414_v54 = vpop.permute.xlu0 %413 }
 0x10e   : > { %v366_v53 = vrot.slane %v364_v51, 4  ;;  %374 = vst.msk [vmem:[#allocation3 + $0x14] sm:$0xf] %vm355_vm0, %v364_v51  ;;  %v417_v8 = vrot.slane %v414_v54, 4 }
 0x110   : > { %v368_v55 = vsel %vm367_vm2, %v365_v52, %v366_v53 }
 0x111   : > { %v370_v56 = vsel %vm369_vm3, %v362_v49, %v368_v55  ;;  %v382_v57 = vpop.permute.xlu1 %381  ;;  %v431_v0 = vpop.permute.xlu0 %430  ;;  %vm763_vm3 = vcmask 412672  }
 0x112   : > { %v384_v59 = vrot.slane %v382_v57, 4  ;;  %391 = vst.msk [vmem:[#allocation3 + $0x20] sm:$0xf] %vm355_vm0, %v382_v57  ;;  %v862_v60 = vcombine.high %v1035_v31, %v370_v56  ;;  %v861_v61 = vcombine.low %v1035_v31, %v370_v56  ;;  %v434_v17 = vrot.slane %v431_v0, 4 }
 0x114   : > { %v385_v62 = vsel %vm367_vm2, %v383_v58, %v384_v59  ;;  %605 = vmatprep.subr.bf16.mxu0 %v862_v60 }
 0x115   : > { %v387_v63 = vsel %vm386_vm4, %v380_v48, %v385_v62  ;;  %v399_v1 = vpop.permute.xlu1 %398  ;;  %v929_v2 = vld [vmem:[#allocation3 + $0x8] ss:$12 sps:$4 sm:$0xff]   ;;  %606 = vmatpush1.bf16.msra.mxu0 %v861_v61  ;;  %v448_v12 = vpop.permute.xlu0 %447 }
 0x116   : > { %v401_v4 = vrot.slane %v399_v1, 4  ;;  %408 = vst.msk [vmem:[#allocation3 + $0x2c] sm:$0xf] %vm355_vm0, %v399_v1  ;;  %894 = vmatpush3.bf16.msra.mxu1 %v929_v2  ;;  %v451_v23 = vrot.slane %v448_v12, 4 }
 0x117   : > { %895 = vmatprep.subr.bf16.mxu1 %v946_v33 }
 0x118   : > { %v402_v5 = vsel %vm367_vm2, %v400_v3, %v401_v4 }
 0x119   : > { %v404_v6 = vsel %vm403_vm5, %v397_v50, %v402_v5  ;;  %v416_v7 = vpop.permute.xlu1 %415  ;;  %v465_v20 = vpop.permute.xlu0 %464 }
 0x11a   : > { %v418_v9 = vrot.slane %v416_v7, 4  ;;  %425 = vst.msk [vmem:[#allocation3 + $0x38] sm:$0xf] %vm355_vm0, %v416_v7  ;;  %v865_v10 = vcombine.high %v387_v63, %v404_v6  ;;  %v864_v11 = vcombine.low %v387_v63, %v404_v6  ;;  %v468_v31 = vrot.slane %v465_v20, 4 }
 0x11c   : > { %v419_v13 = vsel %vm367_vm2, %v417_v8, %v418_v9  ;;  %607 = vmatprep.subr.bf16.mxu0 %v865_v10 }
 0x11d   : > { %v421_v14 = vsel %vm420_vm6, %v414_v54, %v419_v13  ;;  %v433_v15 = vpop.permute.xlu1 %432  ;;  %v930_v16 = vld [vmem:[#allocation3 + $0x20] ss:$12 sps:$4 sm:$0xff]   ;;  %608 = vmatpush1.bf16.msra.mxu0 %v864_v11  ;;  %v482_v34 = vpop.permute.xlu0 %481 }
 0x11e   : > { %v435_v18 = vrot.slane %v433_v15, 4  ;;  %442 = vst.msk [vmem:[#allocation3 + $0x44] sm:$0xf] %vm355_vm0, %v433_v15  ;;  %896 = vmatpush3.bf16.msra.mxu1 %v930_v16  ;;  %v485_v38 = vrot.slane %v482_v34, 4 }
 0x11f   : > { %897 = vmatprep.subr.bf16.mxu1 %v946_v33 }
 0x120   : > { %v436_v19 = vsel %vm367_vm2, %v434_v17, %v435_v18 }
 0x121   : > { %v438_v21 = vsel %vm437_vm7, %v431_v0, %v436_v19  ;;  %v450_v22 = vpop.permute.xlu1 %449 }
 0x122   : > { %v452_v24 = vrot.slane %v450_v22, 4  ;;  %459 = vst.msk [vmem:[#allocation3 + $0x50] sm:$0xf] %vm355_vm0, %v450_v22  ;;  %v868_v25 = vcombine.high %v421_v14, %v438_v21  ;;  %v867_v26 = vcombine.low %v421_v14, %v438_v21 }
 0x124   : > { %v453_v27 = vsel %vm367_vm2, %v451_v23, %v452_v24  ;;  %609 = vmatprep.subr.bf16.mxu0 %v868_v25 }
 0x125   : > { %v455_v28 = vsel %vm454_vm8, %v448_v12, %v453_v27  ;;  %v467_v29 = vpop.permute.xlu1 %466  ;;  %v931_v30 = vld [vmem:[#allocation3 + $0x38] ss:$12 sps:$4 sm:$0xff]   ;;  %610 = vmatpush1.bf16.msra.mxu0 %v867_v26 }
 0x126   : > { %v469_v32 = vrot.slane %v467_v29, 4  ;;  %476 = vst.msk [vmem:[#allocation3 + $0x5c] sm:$0xf] %vm355_vm0, %v467_v29  ;;  %898 = vmatpush3.bf16.msra.mxu1 %v931_v30 }
 0x127   : > { %899 = vmatprep.subr.bf16.mxu1 %v946_v33 }
 0x128   : > { %v470_v35 = vsel %vm367_vm2, %v468_v31, %v469_v32 }
 0x129   : > { %v472_v36 = vsel %vm471_vm9, %v465_v20, %v470_v35  ;;  %v484_v37 = vpop.permute.xlu1 %483 }
 0x12a   : > { %v486_v39 = vrot.slane %v484_v37, 4  ;;  %493 = vst.msk [vmem:[#allocation3 + $0x68] sm:$0xf] %vm355_vm0, %v484_v37  ;;  %v871_v40 = vcombine.high %v455_v28, %v472_v36  ;;  %v870_v41 = vcombine.low %v455_v28, %v472_v36  ;;  %vm760_vm0 = vcmask 1047556  }
 0x12c   : > { %v487_v42 = vsel %vm367_vm2, %v485_v38, %v486_v39  ;;  %611 = vmatprep.subr.bf16.mxu0 %v871_v40 }
 0x12d   : > { %v489_v43 = vsel %vm488_vm10, %v482_v34, %v487_v42  ;;  %v932_v44 = vld [vmem:[#allocation3 + $0x50] ss:$12 sps:$4 sm:$0xff]   ;;  %612 = vmatpush1.bf16.msra.mxu0 %v870_v41  ;;  %v701_v51 = vpop.permute.xlu1 %700 }
 0x12e   : > { %v874_v45 = vcombine.high %v489_v43, %v489_v43  ;;  %v873_v46 = vcombine.low %v489_v43, %v489_v43  ;;  %900 = vmatpush3.bf16.msra.mxu1 %v932_v44  ;;  %v517_v52 = vpop.permute.xlu0 %516 }
 0x12f   : > { %901 = vmatprep.subr.bf16.mxu1 %v946_v33 }
 0x130   : > { %876 = vmatprep.subr.msk.bf16.mxu0 %vm367_vm2, %v874_v45  ;;  %v597_v48 = vsel %vm367_vm2, %v873_v46, 0 }
 0x131   : > { %v933_v49 = vld [vmem:[#allocation3 + $0x68] ss:$0 sps:$4 sm:$0xff]   ;;  %614 = vmatpush1.bf16.msra.mxu0 %v597_v48  ;;  %v705_v53 = vpop.permute.xlu1 %704 }
 0x132   : > { %v603_v50 = vsel %vm367_vm2, %v933_v49, 0  ;;  %v703_v33 = vpop.permute.xlu0 %702  ;;  %vm761_vm2 = vmor %vm760_vm0, %vm759_vm15 }
 0x133   : > { %902 = vmatpush3.bf16.msra.mxu1 %v603_v50  ;;  %v708_v55 = vsel %vm420_vm6, %v703_v33, %v705_v53  ;;  %v707_v58 = vsel %vm420_vm6, %v701_v51, %v703_v33 }
 0x134   : > { %877 = vmatmul.mubr.msk.bf16.vlgmr.msra.gmra.mrb[0].mxu0 %vm591_vm11, %v494_v47 }
 0x136   : > { %904 = vmatmul.mubr.msk.bf16.vlgmr.msra.gmra.mrb[0].mxu1 %vm591_vm11, %v494_v47 }
 0x207   : > { %v639_v54 = vpop.f32.mrb[0].mxu0 }
 0x208   : > { %v640_v56 = vadd.f32 %v639_v54, %v517_v52  ;;  %v641_v57 = vpop.f32.mrb[1].mxu0 }
 0x209   : > { %v642_v59 = vadd.f32 %v641_v57, %v517_v52  ;;  %v643_v60 = vpop.f32.mrb[2].mxu0  ;;  %v680_v61 = vpop.f32.mrb[0].mxu1 }
 0x20a   : > { %v712_v62 = vmul.f32 %v707_v58, %v640_v56  ;;  %v723_v63 = vmul.f32 %v640_v56, %v640_v56  ;;  %v644_v0 = vpop.f32.mrb[3].mxu0  ;;  %v681_v1 = vadd.f32 %v680_v61, %v517_v52  ;;  %v905_v2 = vpop.f32.mrb[1].mxu1 }
 0x20b   : > { %v713_v3 = vmul.f32 %v708_v55, %v642_v59  ;;  %v724_v4 = vmul.f32 %v642_v59, %v642_v59  ;;  %v885_v5 = vpack.c.bf16 %v642_v59, %v640_v56  ;;  %v683_v6 = vpop.f32.mrb[2].mxu1 }
 0x20c   : > { %v726_v7 = vmul.f32 %v723_v63, %v707_v58  ;;  %v725_v8 = vmul.f32 %v681_v1, %v681_v1  ;;  %v714_v9 = vmul.f32 %v705_v53, %v681_v1  ;;  %v906_v10 = vpop.f32.mrb[3].mxu1  ;;  %v886_v19 = vpack.c.bf16 %v681_v1, %v681_v1 }
 0x20d   : > { %v715_v11 = vadd.f32 %v713_v3, %v712_v62  ;;  %v727_v12 = vmul.f32 %v724_v4, %v708_v55 }
 0x20e   : > { %v728_v13 = vmul.f32 %v725_v8, %v705_v53  ;;  %v717_v14 = vsel %vm716_vm12, %v714_v9, 0.0 }
 0x20f   : > { %v729_v15 = vadd.f32 %v727_v12, %v726_v7  ;;  %v718_v16 = vadd.f32 %v717_v14, %v715_v11 }
 0x210   : > { %v730_v17 = vsel %vm716_vm12, %v728_v13, 0.0 }
 0x211   : > { %719 = vadd.xlane.f32.xlu0 %v718_v16  ;;  %v731_v18 = vadd.f32 %v730_v17, %v729_v15 }
 0x213   : > { %732 = vadd.xlane.f32.xlu1 %v731_v18 }
 0x224   : > { %751 = vrot.lane.b32.xlu1 %v886_v19, %s953_s9 }
 0x227   : > { %749 = vrot.lane.b32.xlu0 %v885_v5, %s953_s9 }
 0x29e   : > { %v720_v20 = vpop.xlane.xlu0 %719 }
 0x29f   : > { %722 = vst.msk [vmem:[%s289_s14] sm:$0xff] %vm721_vm13, %v720_v20 }
 0x2a0   : > { %v733_v21 = vpop.xlane.xlu1 %732 }
 0x2a1   : > { %735 = vst.msk [vmem:[%s289_s14] sm:$0xff] %vm734_vm14, %v733_v21 }
 0x2a2   : > { %v750_v22 = vpop.permute.xlu0 %749 }
 0x2a3   : > { %v753_v23 = vrot.slane %v750_v22, 4 }
 0x2a4   : > { %v752_v24 = vpop.permute.xlu1 %751 }
 0x2a5   : > { %v755_v25 = vsel %vm754_vm1, %v753_v23, %v750_v22  ;;  %v756_v26 = vsel %vm754_vm1, %v753_v23, %v752_v24 }
 0x2a6   : > { %762 = vst.msk [vmem:[%s1014_s10] sm:$0xff] %vm761_vm2, %v755_v25 }
 0x2a7   : > { %764 = vst.msk [vmem:[%s1014_s10 + $0x8] sm:$0xf] %vm763_vm3, %v756_v26 }
 0x2a8 PF: > { %s18_s24 = sadd.s32 1, %s940_s24  }
 0x2a9   : > { %p15_p4 = scmp.ge.s32.totalorder %s18_s24, 4  }
 0x2ab   :  { %17 = sbr.rel (!%p15_p4) target bundleno = 1 (0x1), region = 86 }

</bundles_post_ra>
